<compile_context>
chip_gen: v5e
topology: v5e:2x2
jax: 0.10.0
libtpu: 0.0.40
codegen_flags: <defaults>
</compile_context>

<pallas_src>
import jax
import jax.numpy as jnp
from jax import lax
from jax.experimental import pallas as pl
from jax.experimental.pallas import tpu as pltpu

F32 = jnp.float32


def _geometric_controller_kernel(state_ref, ref_ref, par_ref, j_ref, out_ref):
    # ---- helpers: every value is a (1,1) f32 array (single vreg, VPU/EUP only) ----
    def s(ref, i):                               # SMEM scalar -> (1,1)
        return jnp.full((1, 1), ref[i], F32)

    def v3(ref, i):                              # 3 consecutive SMEM scalars
        return (s(ref, i), s(ref, i + 1), s(ref, i + 2))

    def vadd(a, b):
        return (a[0] + b[0], a[1] + b[1], a[2] + b[2])

    def vsub(a, b):
        return (a[0] - b[0], a[1] - b[1], a[2] - b[2])

    def vscale(c, a):
        return (c * a[0], c * a[1], c * a[2])

    def vdot(a, b):
        return a[0] * b[0] + a[1] * b[1] + a[2] * b[2]

    def vcross(a, b):
        return (a[1] * b[2] - a[2] * b[1],
                a[2] * b[0] - a[0] * b[2],
                a[0] * b[1] - a[1] * b[0])

    def vnormalize(a, sign):                     # sign * a / ||a||  (rsqrt on EUP)
        inv = lax.rsqrt(vdot(a, a))
        return vscale(sign * inv, a)

    # ---- unpack parameters / state (scalar reads from SMEM) ----
    kp, kv, kori, kw = s(par_ref, 0), s(par_ref, 1), s(par_ref, 2), s(par_ref, 3)
    m, g = s(par_ref, 4), s(par_ref, 5)
    inv_m = 1.0 / m                              # exact; reused for every "/ m"

    des_pos      = v3(ref_ref, 0)
    des_vel      = v3(ref_ref, 3)
    des_acc      = v3(ref_ref, 6)
    des_acc_dot  = v3(ref_ref, 9)
    des_acc_ddot = v3(ref_ref, 12)
    b1r          = v3(ref_ref, 15)               # reference des_b1
    b1r_dot      = v3(ref_ref, 18)
    b1r_ddot     = v3(ref_ref, 21)

    position = v3(state_ref, 0)
    vel      = v3(state_ref, 7)
    w        = v3(state_ref, 10)                 # angular velocity
    qx, qy, qz, qw = s(state_ref, 3), s(state_ref, 4), s(state_ref, 5), s(state_ref, 6)

    # pypose SO3 (x, y, z, w) quaternion -> rotation matrix R (unit quaternion assumed)
    r00 = 1.0 - 2.0 * (qy * qy + qz * qz); r01 = 2.0 * (qx * qy - qw * qz); r02 = 2.0 * (qx * qz + qw * qy)
    r10 = 2.0 * (qx * qy + qw * qz); r11 = 1.0 - 2.0 * (qx * qx + qz * qz); r12 = 2.0 * (qy * qz - qw * qx)
    r20 = 2.0 * (qx * qz - qw * qy); r21 = 2.0 * (qy * qz + qw * qx); r22 = 1.0 - 2.0 * (qx * qx + qy * qy)
    rcol0 = (r00, r10, r20)
    rcol1 = (r01, r11, r21)
    rcol2 = (r02, r12, r22)                      # = R @ e3

    # inertia rows (J flattened row-major into SMEM)
    j0 = (s(j_ref, 0), s(j_ref, 1), s(j_ref, 2))
    j1 = (s(j_ref, 3), s(j_ref, 4), s(j_ref, 5))
    j2 = (s(j_ref, 6), s(j_ref, 7), s(j_ref, 8))

    def jmat_vec(v):                             # J @ v
        return (vdot(j0, v), vdot(j1, v), vdot(j2, v))

    # ---- thrust magnitude / desired b3 (position PID with ki = 0) ----
    ep = vsub(position, des_pos)
    ev = vsub(vel, des_vel)
    mg = m * g
    des_b3 = (-(kp * ep[0] + kv * ev[0]) + m * des_acc[0],
              -(kp * ep[1] + kv * ev[1]) + m * des_acc[1],
              -(kp * ep[2] + kv * ev[2]) - mg + m * des_acc[2])
    b3 = rcol2
    thrust_des = -vdot(des_b3, b3)
    t_m = thrust_des * inv_m
    err_vel_dot = (-t_m * b3[0] - des_acc[0],
                   -t_m * b3[1] - des_acc[1],
                   g - t_m * b3[2] - des_acc[2])
    des_b3_dot = tuple(-kp * ev[i] - kv * err_vel_dot[i] + m * des_acc_dot[i]
                       for i in range(3))
    # b3_dot = R @ vec2skew(w) @ e3, with vec2skew(w) @ e3 = (w1, -w0, 0)
    b3_dot = (r00 * w[1] - r01 * w[0],
              r10 * w[1] - r11 * w[0],
              r20 * w[1] - r21 * w[0])
    thrust_dot = -vdot(des_b3_dot, b3) - vdot(des_b3, b3_dot)
    err_vel_ddot = tuple((-thrust_dot * b3[i] - thrust_des * b3_dot[i]) * inv_m - des_acc_dot[i]
                         for i in range(3))
    des_b3_ddot = tuple(-kp * err_vel_dot[i] - kv * err_vel_ddot[i] + m * des_acc_ddot[i]
                        for i in range(3))

    des_b3      = vnormalize(des_b3, -1.0)
    des_b3_dot  = vnormalize(des_b3_dot, -1.0)
    des_b3_ddot = vnormalize(des_b3_ddot, -1.0)

    # ---- desired body frame (reassignment order identical to the reference) ----
    b2_raw      = vcross(des_b3, b1r)
    b2_dot_raw  = vadd(vcross(des_b3_dot, b1r), vcross(des_b3, b1r_dot))
    b2_ddot_raw = vadd(vadd(vcross(des_b3_ddot, b1r),
                            vscale(2.0, vcross(des_b3_dot, b1r_dot))),
                       vcross(des_b3, b1r_ddot))
    des_b2 = vnormalize(b2_raw, 1.0)
    # faithful to the reference: derivatives become des_b2 rescaled by 1/||raw deriv||
    des_b2_dot  = vscale(lax.rsqrt(vdot(b2_dot_raw, b2_dot_raw)), des_b2)
    des_b2_ddot = vscale(lax.rsqrt(vdot(b2_ddot_raw, b2_ddot_raw)), des_b2)

    des_b1      = vcross(des_b2, des_b3)
    b1_dot_raw  = vadd(vcross(des_b2_dot, des_b3), vcross(des_b2, des_b3_dot))
    b1_ddot_raw = vadd(vadd(vcross(des_b2_ddot, des_b3),
                            vscale(2.0, vcross(des_b2_dot, des_b3_dot))),
                       vcross(des_b2, des_b3_ddot))
    des_b2      = vnormalize(des_b2, 1.0)        # second normalization (faithful)
    des_b1_dot  = vscale(lax.rsqrt(vdot(b1_dot_raw, b1_dot_raw)), des_b2)
    des_b1_ddot = vscale(lax.rsqrt(vdot(b1_ddot_raw, b1_ddot_raw)), des_b2)

    # des_ang_vel = skew2vec(Rd^T @ Rd_dot): only 3 matrix elements are needed,
    # each one a dot product of desired-frame columns.
    des_ang_vel = (-vdot(des_b2, des_b3_dot),
                    vdot(des_b1, des_b3_dot),
                   -vdot(des_b1, des_b2_dot))
    wd0, wd1, wd2 = des_ang_vel
    # des_ang_acc = skew2vec(Rd^T @ Rd_ddot - Wd @ Wd), with (Wd@Wd)[i][j] = wd_i*wd_j (i!=j)
    des_ang_acc = (-(vdot(des_b2, des_b3_ddot) - wd1 * wd2),
                    (vdot(des_b1, des_b3_ddot) - wd0 * wd2),
                   -(vdot(des_b1, des_b2_ddot) - wd0 * wd1))
    ad0, ad1, ad2 = des_ang_acc

    # ---- attitude loop (pose PID with ki = 0) ----
    # pose_err = 0.5 * skew2vec(Rd^T R - R^T Rd)
    e12 = vdot(des_b2, rcol2) - vdot(rcol1, des_b3)
    e02 = vdot(des_b1, rcol2) - vdot(rcol0, des_b3)
    e01 = vdot(des_b1, rcol1) - vdot(rcol0, des_b2)
    pose_err = (-0.5 * e12, 0.5 * e02, -0.5 * e01)

    # Rd @ des_ang_vel (linear combination of Rd's columns), then R^T @ (.)
    u = (des_b1[0] * wd0 + des_b2[0] * wd1 + des_b3[0] * wd2,
         des_b1[1] * wd0 + des_b2[1] * wd1 + des_b3[1] * wd2,
         des_b1[2] * wd0 + des_b2[2] * wd1 + des_b3[2] * wd2)
    rtu = (vdot(rcol0, u), vdot(rcol1, u), vdot(rcol2, u))
    ang_err_dot = vsub(w, rtu)

    jw = jmat_vec(w)
    gyro = vcross(w, jw)
    M = tuple(-(kori * pose_err[i] + kw * ang_err_dot[i]) + gyro[i] for i in range(3))

    # temp_M = vec2skew(w) @ (R^T Rd des_ang_vel - R^T Rd des_ang_acc) = w x (rtu - rtua)
    ua = (des_b1[0] * ad0 + des_b2[0] * ad1 + des_b3[0] * ad2,
          des_b1[1] * ad0 + des_b2[1] * ad1 + des_b3[1] * ad2,
          des_b1[2] * ad0 + des_b2[2] * ad1 + des_b3[2] * ad2)
    rtua = (vdot(rcol0, ua), vdot(rcol1, ua), vdot(rcol2, ua))
    temp_m = vcross(w, vsub(rtu, rtua))
    jtemp = jmat_vec(temp_m)
    M = (M[0] - jtemp[0], M[1] - jtemp[1], M[2] - jtemp[2])

    thrust_out = jnp.maximum(thrust_des, 0.0)

    # ---- assemble (1, 4) output: [max(0, thrust), Mx, My, Mz] — single vector store ----
    lane = lax.broadcasted_iota(jnp.int32, (1, 4), 1)
    out = jnp.where(lane == 0, thrust_out, 0.0)
    out = jnp.where(lane == 1, M[0], out)
    out = jnp.where(lane == 2, M[1], out)
    out = jnp.where(lane == 3, M[2], out)
    out_ref[...] = out


def geometric_controller_forward(state, ref_state, params, J):
    """state: (13,), ref_state: (24,), params: (6,)=[kp,kv,kori,kw,mass,g], J: (3,3).
    Returns (4,) = [max(0, thrust_des), M_x, M_y, M_z]."""
    out = pl.pallas_call(
        _geometric_controller_kernel,
        out_shape=jax.ShapeDtypeStruct((1, 4), jnp.float32),
        in_specs=[
            pl.BlockSpec(memory_space=pltpu.MemorySpace.SMEM),   # state (13,)
            pl.BlockSpec(memory_space=pltpu.MemorySpace.SMEM),   # ref_state (24,)
            pl.BlockSpec(memory_space=pltpu.MemorySpace.SMEM),   # params (6,)
            pl.BlockSpec(memory_space=pltpu.MemorySpace.SMEM),   # J flattened (9,)
        ],
        out_specs=pl.BlockSpec(memory_space=pltpu.MemorySpace.VMEM),
    )(state.astype(jnp.float32), ref_state.astype(jnp.float32),
      params.astype(jnp.float32), J.astype(jnp.float32).reshape(-1))
    return out.reshape(-1)


# ---------------- pure-JAX reference (mirrors the PyTorch code) ----------------
def _reference_forward(state, ref_state, params, J):
    kp, kv, kori, kw, m, g = (params[i] for i in range(6))
    e3 = jnp.array([0.0, 0.0, 1.0], F32)

    def vec2skew(v):
        return jnp.array([[0.0, -v[2], v[1]], [v[2], 0.0, -v[0]], [-v[1], v[0], 0.0]], F32)

    def skew2vec(A):
        return jnp.array([-A[1, 2], A[0, 2], -A[0, 1]], F32)

    des_pos, des_vel, des_acc = ref_state[0:3], ref_state[3:6], ref_state[6:9]
    des_acc_dot, des_acc_ddot = ref_state[9:12], ref_state[12:15]
    b1r, b1r_dot, b1r_ddot = ref_state[15:18], ref_state[18:21], ref_state[21:24]
    position, q, vel, w = state[0:3], state[3:7], state[7:10], state[10:13]
    x, y, z, qw = q[0], q[1], q[2], q[3]
    R = jnp.array([[1 - 2 * (y * y + z * z), 2 * (x * y - qw * z), 2 * (x * z + qw * y)],
                   [2 * (x * y + qw * z), 1 - 2 * (x * x + z * z), 2 * (y * z - qw * x)],
                   [2 * (x * z - qw * y), 2 * (y * z + qw * x), 1 - 2 * (x * x + y * y)]], F32)

    des_b3 = -(kp * (position - des_pos) + kv * (vel - des_vel)) - m * g * e3 + m * des_acc
    b3 = R @ e3
    thrust_des = -des_b3 @ b3
    err_vel_dot = g * e3 - thrust_des / m * b3 - des_acc
    des_b3_dot = -kp * (vel - des_vel) - kv * err_vel_dot + m * des_acc_dot
    b3_dot = R @ vec2skew(w) @ e3
    thrust_dot = -des_b3_dot @ b3 - des_b3 @ b3_dot
    err_vel_ddot = (-thrust_dot * b3 - thrust_des * b3_dot) / m - des_acc_dot
    des_b3_ddot = -kp * err_vel_dot - kv * err_vel_ddot + m * des_acc_ddot
    des_b3 = -des_b3 / jnp.linalg.norm(des_b3)
    des_b3_dot = -des_b3_dot / jnp.linalg.norm(des_b3_dot)
    des_b3_ddot = -des_b3_ddot / jnp.linalg.norm(des_b3_ddot)

    b2_raw = jnp.cross(des_b3, b1r)
    b2_dot_raw = jnp.cross(des_b3_dot, b1r) + jnp.cross(des_b3, b1r_dot)
    b2_ddot_raw = (jnp.cross(des_b3_ddot, b1r) + 2 * jnp.cross(des_b3_dot, b1r_dot)
                   + jnp.cross(des_b3, b1r_ddot))
    des_b2 = b2_raw / jnp.linalg.norm(b2_raw)
    des_b2_dot = des_b2 / jnp.linalg.norm(b2_dot_raw)
    des_b2_ddot = des_b2 / jnp.linalg.norm(b2_ddot_raw)

    des_b1 = jnp.cross(des_b2, des_b3)
    b1_dot_raw = jnp.cross(des_b2_dot, des_b3) + jnp.cross(des_b2, des_b3_dot)
    b1_ddot_raw = (jnp.cross(des_b2_ddot, des_b3) + 2 * jnp.cross(des_b2_dot, des_b3_dot)
                   + jnp.cross(des_b2, des_b3_ddot))
    des_b2 = des_b2 / jnp.linalg.norm(des_b2)
    des_b1_dot = des_b2 / jnp.linalg.norm(b1_dot_raw)
    des_b1_ddot = des_b2 / jnp.linalg.norm(b1_ddot_raw)

    Rd = jnp.stack([des_b1, des_b2, des_b3], axis=1)
    Rd_dot = jnp.stack([des_b1_dot, des_b2_dot, des_b3_dot], axis=1)
    Rd_ddot = jnp.stack([des_b1_ddot, des_b2_ddot, des_b3_ddot], axis=1)
    wd = skew2vec(Rd.T @ Rd_dot)
    Wd = vec2skew(wd)
    ad = skew2vec(Rd.T @ Rd_ddot - Wd @ Wd)
    pose_err = 0.5 * skew2vec(Rd.T @ R - R.T @ Rd)
    ang_err_dot = w - R.T @ (Rd @ wd)
    M = -(kori * pose_err + kw * ang_err_dot) + jnp.cross(w, J @ w)
    temp_M = jnp.cross(w, R.T @ Rd @ wd - R.T @ Rd @ ad)
    M = M - J @ temp_M
    return jnp.concatenate([jnp.maximum(thrust_des, 0.0).reshape(1), M])


if __name__ == "__main__":
    key = jax.random.PRNGKey(0)
    k1, k2 = jax.random.split(key)

    # state = [position(3), quaternion(x,y,z,w)(4), velocity(3), angular_velocity(3)]
    state = jax.random.normal(k1, (13,), jnp.float32) * 0.5
    q = state[3:7]
    q = q / jnp.linalg.norm(q)                 # SO3 quaternion must be unit-norm
    state = state.at[3:7].set(q)

    # ref_state = [pos, vel, acc, acc_dot, acc_ddot, b1, b1_dot, b1_ddot] (each 3)
    ref_state = jax.random.normal(k2, (24,), jnp.float32) * 0.5

    # controller parameters: kp, kv, kori, kw, mass, g
    params = jnp.array([4.0, 2.5, 3.0, 0.5, 1.2, 9.81], jnp.float32)
    # inertia matrix
    J = jnp.diag(jnp.array([0.02, 0.025, 0.03], jnp.float32))

    out = geometric_controller_forward(state, ref_state, params, J)
    out = jax.block_until_ready(out)
    assert out.shape == (4,), out.shape
    assert bool(jnp.all(jnp.isfinite(out))), out

    ref = jax.block_until_ready(_reference_forward(state, ref_state, params, J))
    assert bool(jnp.allclose(out, ref, rtol=1e-2, atol=1e-2)), (out, ref)

    print("KERNEL_OK")
</pallas_src>

<mosaic_0001>
module attributes {stable_mosaic.version = 11 : i64} {
  func.func @_geometric_controller_kernel(%arg0: memref<13xf32, #tpu.memory_space<smem>>, %arg1: memref<24xf32, #tpu.memory_space<smem>>, %arg2: memref<6xf32, #tpu.memory_space<smem>>, %arg3: memref<9xf32, #tpu.memory_space<smem>>, %arg4: memref<1x4xf32, #tpu.memory_space<vmem>>) attributes {dimension_semantics = [], scalar_prefetch = 0 : i64, scratch_operands = 0 : i64, tpu.core_type = #tpu.core_type<tc>} {
    %c0 = arith.constant 0 : index
    %0 = memref.load %arg2[%c0] : memref<6xf32, #tpu.memory_space<smem>>
    %1 = vector.broadcast %0 : f32 to vector<1x1xf32>
    %c1 = arith.constant 1 : index
    %2 = memref.load %arg2[%c1] : memref<6xf32, #tpu.memory_space<smem>>
    %3 = vector.broadcast %2 : f32 to vector<1x1xf32>
    %c2 = arith.constant 2 : index
    %4 = memref.load %arg2[%c2] : memref<6xf32, #tpu.memory_space<smem>>
    %5 = vector.broadcast %4 : f32 to vector<1x1xf32>
    %c3 = arith.constant 3 : index
    %6 = memref.load %arg2[%c3] : memref<6xf32, #tpu.memory_space<smem>>
    %7 = vector.broadcast %6 : f32 to vector<1x1xf32>
    %c4 = arith.constant 4 : index
    %8 = memref.load %arg2[%c4] : memref<6xf32, #tpu.memory_space<smem>>
    %9 = vector.broadcast %8 : f32 to vector<1x1xf32>
    %c5 = arith.constant 5 : index
    %10 = memref.load %arg2[%c5] : memref<6xf32, #tpu.memory_space<smem>>
    %11 = vector.broadcast %10 : f32 to vector<1x1xf32>
    %cst = arith.constant 1.000000e+00 : f32
    %12 = vector.broadcast %cst : f32 to vector<1x1xf32>
    %13 = arith.divf %12, %9 : vector<1x1xf32>
    %c0_0 = arith.constant 0 : index
    %14 = memref.load %arg1[%c0_0] : memref<24xf32, #tpu.memory_space<smem>>
    %15 = vector.broadcast %14 : f32 to vector<1x1xf32>
    %c1_1 = arith.constant 1 : index
    %16 = memref.load %arg1[%c1_1] : memref<24xf32, #tpu.memory_space<smem>>
    %17 = vector.broadcast %16 : f32 to vector<1x1xf32>
    %c2_2 = arith.constant 2 : index
    %18 = memref.load %arg1[%c2_2] : memref<24xf32, #tpu.memory_space<smem>>
    %19 = vector.broadcast %18 : f32 to vector<1x1xf32>
    %c3_3 = arith.constant 3 : index
    %20 = memref.load %arg1[%c3_3] : memref<24xf32, #tpu.memory_space<smem>>
    %21 = vector.broadcast %20 : f32 to vector<1x1xf32>
    %c4_4 = arith.constant 4 : index
    %22 = memref.load %arg1[%c4_4] : memref<24xf32, #tpu.memory_space<smem>>
    %23 = vector.broadcast %22 : f32 to vector<1x1xf32>
    %c5_5 = arith.constant 5 : index
    %24 = memref.load %arg1[%c5_5] : memref<24xf32, #tpu.memory_space<smem>>
    %25 = vector.broadcast %24 : f32 to vector<1x1xf32>
    %c6 = arith.constant 6 : index
    %26 = memref.load %arg1[%c6] : memref<24xf32, #tpu.memory_space<smem>>
    %27 = vector.broadcast %26 : f32 to vector<1x1xf32>
    %c7 = arith.constant 7 : index
    %28 = memref.load %arg1[%c7] : memref<24xf32, #tpu.memory_space<smem>>
    %29 = vector.broadcast %28 : f32 to vector<1x1xf32>
    %c8 = arith.constant 8 : index
    %30 = memref.load %arg1[%c8] : memref<24xf32, #tpu.memory_space<smem>>
    %31 = vector.broadcast %30 : f32 to vector<1x1xf32>
    %c9 = arith.constant 9 : index
    %32 = memref.load %arg1[%c9] : memref<24xf32, #tpu.memory_space<smem>>
    %33 = vector.broadcast %32 : f32 to vector<1x1xf32>
    %c10 = arith.constant 10 : index
    %34 = memref.load %arg1[%c10] : memref<24xf32, #tpu.memory_space<smem>>
    %35 = vector.broadcast %34 : f32 to vector<1x1xf32>
    %c11 = arith.constant 11 : index
    %36 = memref.load %arg1[%c11] : memref<24xf32, #tpu.memory_space<smem>>
    %37 = vector.broadcast %36 : f32 to vector<1x1xf32>
    %c12 = arith.constant 12 : index
    %38 = memref.load %arg1[%c12] : memref<24xf32, #tpu.memory_space<smem>>
    %39 = vector.broadcast %38 : f32 to vector<1x1xf32>
    %c13 = arith.constant 13 : index
    %40 = memref.load %arg1[%c13] : memref<24xf32, #tpu.memory_space<smem>>
    %41 = vector.broadcast %40 : f32 to vector<1x1xf32>
    %c14 = arith.constant 14 : index
    %42 = memref.load %arg1[%c14] : memref<24xf32, #tpu.memory_space<smem>>
    %43 = vector.broadcast %42 : f32 to vector<1x1xf32>
    %c15 = arith.constant 15 : index
    %44 = memref.load %arg1[%c15] : memref<24xf32, #tpu.memory_space<smem>>
    %45 = vector.broadcast %44 : f32 to vector<1x1xf32>
    %c16 = arith.constant 16 : index
    %46 = memref.load %arg1[%c16] : memref<24xf32, #tpu.memory_space<smem>>
    %47 = vector.broadcast %46 : f32 to vector<1x1xf32>
    %c17 = arith.constant 17 : index
    %48 = memref.load %arg1[%c17] : memref<24xf32, #tpu.memory_space<smem>>
    %49 = vector.broadcast %48 : f32 to vector<1x1xf32>
    %c18 = arith.constant 18 : index
    %50 = memref.load %arg1[%c18] : memref<24xf32, #tpu.memory_space<smem>>
    %51 = vector.broadcast %50 : f32 to vector<1x1xf32>
    %c19 = arith.constant 19 : index
    %52 = memref.load %arg1[%c19] : memref<24xf32, #tpu.memory_space<smem>>
    %53 = vector.broadcast %52 : f32 to vector<1x1xf32>
    %c20 = arith.constant 20 : index
    %54 = memref.load %arg1[%c20] : memref<24xf32, #tpu.memory_space<smem>>
    %55 = vector.broadcast %54 : f32 to vector<1x1xf32>
    %c21 = arith.constant 21 : index
    %56 = memref.load %arg1[%c21] : memref<24xf32, #tpu.memory_space<smem>>
    %57 = vector.broadcast %56 : f32 to vector<1x1xf32>
    %c22 = arith.constant 22 : index
    %58 = memref.load %arg1[%c22] : memref<24xf32, #tpu.memory_space<smem>>
    %59 = vector.broadcast %58 : f32 to vector<1x1xf32>
    %c23 = arith.constant 23 : index
    %60 = memref.load %arg1[%c23] : memref<24xf32, #tpu.memory_space<smem>>
    %61 = vector.broadcast %60 : f32 to vector<1x1xf32>
    %c0_6 = arith.constant 0 : index
    %62 = memref.load %arg0[%c0_6] : memref<13xf32, #tpu.memory_space<smem>>
    %63 = vector.broadcast %62 : f32 to vector<1x1xf32>
    %c1_7 = arith.constant 1 : index
    %64 = memref.load %arg0[%c1_7] : memref<13xf32, #tpu.memory_space<smem>>
    %65 = vector.broadcast %64 : f32 to vector<1x1xf32>
    %c2_8 = arith.constant 2 : index
    %66 = memref.load %arg0[%c2_8] : memref<13xf32, #tpu.memory_space<smem>>
    %67 = vector.broadcast %66 : f32 to vector<1x1xf32>
    %c7_9 = arith.constant 7 : index
    %68 = memref.load %arg0[%c7_9] : memref<13xf32, #tpu.memory_space<smem>>
    %69 = vector.broadcast %68 : f32 to vector<1x1xf32>
    %c8_10 = arith.constant 8 : index
    %70 = memref.load %arg0[%c8_10] : memref<13xf32, #tpu.memory_space<smem>>
    %71 = vector.broadcast %70 : f32 to vector<1x1xf32>
    %c9_11 = arith.constant 9 : index
    %72 = memref.load %arg0[%c9_11] : memref<13xf32, #tpu.memory_space<smem>>
    %73 = vector.broadcast %72 : f32 to vector<1x1xf32>
    %c10_12 = arith.constant 10 : index
    %74 = memref.load %arg0[%c10_12] : memref<13xf32, #tpu.memory_space<smem>>
    %75 = vector.broadcast %74 : f32 to vector<1x1xf32>
    %c11_13 = arith.constant 11 : index
    %76 = memref.load %arg0[%c11_13] : memref<13xf32, #tpu.memory_space<smem>>
    %77 = vector.broadcast %76 : f32 to vector<1x1xf32>
    %c12_14 = arith.constant 12 : index
    %78 = memref.load %arg0[%c12_14] : memref<13xf32, #tpu.memory_space<smem>>
    %79 = vector.broadcast %78 : f32 to vector<1x1xf32>
    %c3_15 = arith.constant 3 : index
    %80 = memref.load %arg0[%c3_15] : memref<13xf32, #tpu.memory_space<smem>>
    %81 = vector.broadcast %80 : f32 to vector<1x1xf32>
    %c4_16 = arith.constant 4 : index
    %82 = memref.load %arg0[%c4_16] : memref<13xf32, #tpu.memory_space<smem>>
    %83 = vector.broadcast %82 : f32 to vector<1x1xf32>
    %c5_17 = arith.constant 5 : index
    %84 = memref.load %arg0[%c5_17] : memref<13xf32, #tpu.memory_space<smem>>
    %85 = vector.broadcast %84 : f32 to vector<1x1xf32>
    %c6_18 = arith.constant 6 : index
    %86 = memref.load %arg0[%c6_18] : memref<13xf32, #tpu.memory_space<smem>>
    %87 = vector.broadcast %86 : f32 to vector<1x1xf32>
    %88 = arith.mulf %83, %83 : vector<1x1xf32>
    %89 = arith.mulf %85, %85 : vector<1x1xf32>
    %90 = arith.addf %88, %89 : vector<1x1xf32>
    %cst_19 = arith.constant 2.000000e+00 : f32
    %91 = vector.broadcast %cst_19 : f32 to vector<1x1xf32>
    %92 = arith.mulf %91, %90 : vector<1x1xf32>
    %cst_20 = arith.constant 1.000000e+00 : f32
    %93 = vector.broadcast %cst_20 : f32 to vector<1x1xf32>
    %94 = arith.subf %93, %92 : vector<1x1xf32>
    %95 = arith.mulf %81, %83 : vector<1x1xf32>
    %96 = arith.mulf %87, %85 : vector<1x1xf32>
    %97 = arith.subf %95, %96 : vector<1x1xf32>
    %cst_21 = arith.constant 2.000000e+00 : f32
    %98 = vector.broadcast %cst_21 : f32 to vector<1x1xf32>
    %99 = arith.mulf %98, %97 : vector<1x1xf32>
    %100 = arith.mulf %81, %85 : vector<1x1xf32>
    %101 = arith.mulf %87, %83 : vector<1x1xf32>
    %102 = arith.addf %100, %101 : vector<1x1xf32>
    %cst_22 = arith.constant 2.000000e+00 : f32
    %103 = vector.broadcast %cst_22 : f32 to vector<1x1xf32>
    %104 = arith.mulf %103, %102 : vector<1x1xf32>
    %105 = arith.mulf %81, %83 : vector<1x1xf32>
    %106 = arith.mulf %87, %85 : vector<1x1xf32>
    %107 = arith.addf %105, %106 : vector<1x1xf32>
    %cst_23 = arith.constant 2.000000e+00 : f32
    %108 = vector.broadcast %cst_23 : f32 to vector<1x1xf32>
    %109 = arith.mulf %108, %107 : vector<1x1xf32>
    %110 = arith.mulf %81, %81 : vector<1x1xf32>
    %111 = arith.mulf %85, %85 : vector<1x1xf32>
    %112 = arith.addf %110, %111 : vector<1x1xf32>
    %cst_24 = arith.constant 2.000000e+00 : f32
    %113 = vector.broadcast %cst_24 : f32 to vector<1x1xf32>
    %114 = arith.mulf %113, %112 : vector<1x1xf32>
    %cst_25 = arith.constant 1.000000e+00 : f32
    %115 = vector.broadcast %cst_25 : f32 to vector<1x1xf32>
    %116 = arith.subf %115, %114 : vector<1x1xf32>
    %117 = arith.mulf %83, %85 : vector<1x1xf32>
    %118 = arith.mulf %87, %81 : vector<1x1xf32>
    %119 = arith.subf %117, %118 : vector<1x1xf32>
    %cst_26 = arith.constant 2.000000e+00 : f32
    %120 = vector.broadcast %cst_26 : f32 to vector<1x1xf32>
    %121 = arith.mulf %120, %119 : vector<1x1xf32>
    %122 = arith.mulf %81, %85 : vector<1x1xf32>
    %123 = arith.mulf %87, %83 : vector<1x1xf32>
    %124 = arith.subf %122, %123 : vector<1x1xf32>
    %cst_27 = arith.constant 2.000000e+00 : f32
    %125 = vector.broadcast %cst_27 : f32 to vector<1x1xf32>
    %126 = arith.mulf %125, %124 : vector<1x1xf32>
    %127 = arith.mulf %83, %85 : vector<1x1xf32>
    %128 = arith.mulf %87, %81 : vector<1x1xf32>
    %129 = arith.addf %127, %128 : vector<1x1xf32>
    %cst_28 = arith.constant 2.000000e+00 : f32
    %130 = vector.broadcast %cst_28 : f32 to vector<1x1xf32>
    %131 = arith.mulf %130, %129 : vector<1x1xf32>
    %132 = arith.mulf %81, %81 : vector<1x1xf32>
    %133 = arith.mulf %83, %83 : vector<1x1xf32>
    %134 = arith.addf %132, %133 : vector<1x1xf32>
    %cst_29 = arith.constant 2.000000e+00 : f32
    %135 = vector.broadcast %cst_29 : f32 to vector<1x1xf32>
    %136 = arith.mulf %135, %134 : vector<1x1xf32>
    %cst_30 = arith.constant 1.000000e+00 : f32
    %137 = vector.broadcast %cst_30 : f32 to vector<1x1xf32>
    %138 = arith.subf %137, %136 : vector<1x1xf32>
    %c0_31 = arith.constant 0 : index
    %139 = memref.load %arg3[%c0_31] : memref<9xf32, #tpu.memory_space<smem>>
    %140 = vector.broadcast %139 : f32 to vector<1x1xf32>
    %c1_32 = arith.constant 1 : index
    %141 = memref.load %arg3[%c1_32] : memref<9xf32, #tpu.memory_space<smem>>
    %142 = vector.broadcast %141 : f32 to vector<1x1xf32>
    %c2_33 = arith.constant 2 : index
    %143 = memref.load %arg3[%c2_33] : memref<9xf32, #tpu.memory_space<smem>>
    %144 = vector.broadcast %143 : f32 to vector<1x1xf32>
    %c3_34 = arith.constant 3 : index
    %145 = memref.load %arg3[%c3_34] : memref<9xf32, #tpu.memory_space<smem>>
    %146 = vector.broadcast %145 : f32 to vector<1x1xf32>
    %c4_35 = arith.constant 4 : index
    %147 = memref.load %arg3[%c4_35] : memref<9xf32, #tpu.memory_space<smem>>
    %148 = vector.broadcast %147 : f32 to vector<1x1xf32>
    %c5_36 = arith.constant 5 : index
    %149 = memref.load %arg3[%c5_36] : memref<9xf32, #tpu.memory_space<smem>>
    %150 = vector.broadcast %149 : f32 to vector<1x1xf32>
    %c6_37 = arith.constant 6 : index
    %151 = memref.load %arg3[%c6_37] : memref<9xf32, #tpu.memory_space<smem>>
    %152 = vector.broadcast %151 : f32 to vector<1x1xf32>
    %c7_38 = arith.constant 7 : index
    %153 = memref.load %arg3[%c7_38] : memref<9xf32, #tpu.memory_space<smem>>
    %154 = vector.broadcast %153 : f32 to vector<1x1xf32>
    %c8_39 = arith.constant 8 : index
    %155 = memref.load %arg3[%c8_39] : memref<9xf32, #tpu.memory_space<smem>>
    %156 = vector.broadcast %155 : f32 to vector<1x1xf32>
    %157 = arith.subf %63, %15 : vector<1x1xf32>
    %158 = arith.subf %65, %17 : vector<1x1xf32>
    %159 = arith.subf %67, %19 : vector<1x1xf32>
    %160 = arith.subf %69, %21 : vector<1x1xf32>
    %161 = arith.subf %71, %23 : vector<1x1xf32>
    %162 = arith.subf %73, %25 : vector<1x1xf32>
    %163 = arith.mulf %9, %11 : vector<1x1xf32>
    %164 = arith.mulf %1, %157 : vector<1x1xf32>
    %165 = arith.mulf %3, %160 : vector<1x1xf32>
    %166 = arith.addf %164, %165 : vector<1x1xf32>
    %cst_40 = arith.constant 0.000000e+00 : f32
    %167 = vector.broadcast %cst_40 : f32 to vector<1x1xf32>
    %168 = arith.subf %167, %166 : vector<1x1xf32>
    %169 = arith.mulf %9, %27 : vector<1x1xf32>
    %170 = arith.addf %168, %169 : vector<1x1xf32>
    %171 = arith.mulf %1, %158 : vector<1x1xf32>
    %172 = arith.mulf %3, %161 : vector<1x1xf32>
    %173 = arith.addf %171, %172 : vector<1x1xf32>
    %cst_41 = arith.constant 0.000000e+00 : f32
    %174 = vector.broadcast %cst_41 : f32 to vector<1x1xf32>
    %175 = arith.subf %174, %173 : vector<1x1xf32>
    %176 = arith.mulf %9, %29 : vector<1x1xf32>
    %177 = arith.addf %175, %176 : vector<1x1xf32>
    %178 = arith.mulf %1, %159 : vector<1x1xf32>
    %179 = arith.mulf %3, %162 : vector<1x1xf32>
    %180 = arith.addf %178, %179 : vector<1x1xf32>
    %cst_42 = arith.constant 0.000000e+00 : f32
    %181 = vector.broadcast %cst_42 : f32 to vector<1x1xf32>
    %182 = arith.subf %181, %180 : vector<1x1xf32>
    %183 = arith.subf %182, %163 : vector<1x1xf32>
    %184 = arith.mulf %9, %31 : vector<1x1xf32>
    %185 = arith.addf %183, %184 : vector<1x1xf32>
    %186 = arith.mulf %170, %104 : vector<1x1xf32>
    %187 = arith.mulf %177, %121 : vector<1x1xf32>
    %188 = arith.addf %186, %187 : vector<1x1xf32>
    %189 = arith.mulf %185, %138 : vector<1x1xf32>
    %190 = arith.addf %188, %189 : vector<1x1xf32>
    %cst_43 = arith.constant 0.000000e+00 : f32
    %191 = vector.broadcast %cst_43 : f32 to vector<1x1xf32>
    %192 = arith.subf %191, %190 : vector<1x1xf32>
    %193 = arith.mulf %192, %13 : vector<1x1xf32>
    %cst_44 = arith.constant 0.000000e+00 : f32
    %194 = vector.broadcast %cst_44 : f32 to vector<1x1xf32>
    %195 = arith.subf %194, %193 : vector<1x1xf32>
    %196 = arith.mulf %195, %104 : vector<1x1xf32>
    %197 = arith.subf %196, %27 : vector<1x1xf32>
    %cst_45 = arith.constant 0.000000e+00 : f32
    %198 = vector.broadcast %cst_45 : f32 to vector<1x1xf32>
    %199 = arith.subf %198, %193 : vector<1x1xf32>
    %200 = arith.mulf %199, %121 : vector<1x1xf32>
    %201 = arith.subf %200, %29 : vector<1x1xf32>
    %202 = arith.mulf %193, %138 : vector<1x1xf32>
    %203 = arith.subf %11, %202 : vector<1x1xf32>
    %204 = arith.subf %203, %31 : vector<1x1xf32>
    %cst_46 = arith.constant 0.000000e+00 : f32
    %205 = vector.broadcast %cst_46 : f32 to vector<1x1xf32>
    %206 = arith.subf %205, %1 : vector<1x1xf32>
    %207 = arith.mulf %206, %160 : vector<1x1xf32>
    %208 = arith.mulf %3, %197 : vector<1x1xf32>
    %209 = arith.subf %207, %208 : vector<1x1xf32>
    %210 = arith.mulf %9, %33 : vector<1x1xf32>
    %211 = arith.addf %209, %210 : vector<1x1xf32>
    %cst_47 = arith.constant 0.000000e+00 : f32
    %212 = vector.broadcast %cst_47 : f32 to vector<1x1xf32>
    %213 = arith.subf %212, %1 : vector<1x1xf32>
    %214 = arith.mulf %213, %161 : vector<1x1xf32>
    %215 = arith.mulf %3, %201 : vector<1x1xf32>
    %216 = arith.subf %214, %215 : vector<1x1xf32>
    %217 = arith.mulf %9, %35 : vector<1x1xf32>
    %218 = arith.addf %216, %217 : vector<1x1xf32>
    %cst_48 = arith.constant 0.000000e+00 : f32
    %219 = vector.broadcast %cst_48 : f32 to vector<1x1xf32>
    %220 = arith.subf %219, %1 : vector<1x1xf32>
    %221 = arith.mulf %220, %162 : vector<1x1xf32>
    %222 = arith.mulf %3, %204 : vector<1x1xf32>
    %223 = arith.subf %221, %222 : vector<1x1xf32>
    %224 = arith.mulf %9, %37 : vector<1x1xf32>
    %225 = arith.addf %223, %224 : vector<1x1xf32>
    %226 = arith.mulf %94, %77 : vector<1x1xf32>
    %227 = arith.mulf %99, %75 : vector<1x1xf32>
    %228 = arith.subf %226, %227 : vector<1x1xf32>
    %229 = arith.mulf %109, %77 : vector<1x1xf32>
    %230 = arith.mulf %116, %75 : vector<1x1xf32>
    %231 = arith.subf %229, %230 : vector<1x1xf32>
    %232 = arith.mulf %126, %77 : vector<1x1xf32>
    %233 = arith.mulf %131, %75 : vector<1x1xf32>
    %234 = arith.subf %232, %233 : vector<1x1xf32>
    %235 = arith.mulf %211, %104 : vector<1x1xf32>
    %236 = arith.mulf %218, %121 : vector<1x1xf32>
    %237 = arith.addf %235, %236 : vector<1x1xf32>
    %238 = arith.mulf %225, %138 : vector<1x1xf32>
    %239 = arith.addf %237, %238 : vector<1x1xf32>
    %cst_49 = arith.constant 0.000000e+00 : f32
    %240 = vector.broadcast %cst_49 : f32 to vector<1x1xf32>
    %241 = arith.subf %240, %239 : vector<1x1xf32>
    %242 = arith.mulf %170, %228 : vector<1x1xf32>
    %243 = arith.mulf %177, %231 : vector<1x1xf32>
    %244 = arith.addf %242, %243 : vector<1x1xf32>
    %245 = arith.mulf %185, %234 : vector<1x1xf32>
    %246 = arith.addf %244, %245 : vector<1x1xf32>
    %247 = arith.subf %241, %246 : vector<1x1xf32>
    %cst_50 = arith.constant 0.000000e+00 : f32
    %248 = vector.broadcast %cst_50 : f32 to vector<1x1xf32>
    %249 = arith.subf %248, %247 : vector<1x1xf32>
    %250 = arith.mulf %249, %104 : vector<1x1xf32>
    %251 = arith.mulf %192, %228 : vector<1x1xf32>
    %252 = arith.subf %250, %251 : vector<1x1xf32>
    %253 = arith.mulf %252, %13 : vector<1x1xf32>
    %254 = arith.subf %253, %33 : vector<1x1xf32>
    %cst_51 = arith.constant 0.000000e+00 : f32
    %255 = vector.broadcast %cst_51 : f32 to vector<1x1xf32>
    %256 = arith.subf %255, %247 : vector<1x1xf32>
    %257 = arith.mulf %256, %121 : vector<1x1xf32>
    %258 = arith.mulf %192, %231 : vector<1x1xf32>
    %259 = arith.subf %257, %258 : vector<1x1xf32>
    %260 = arith.mulf %259, %13 : vector<1x1xf32>
    %261 = arith.subf %260, %35 : vector<1x1xf32>
    %cst_52 = arith.constant 0.000000e+00 : f32
    %262 = vector.broadcast %cst_52 : f32 to vector<1x1xf32>
    %263 = arith.subf %262, %247 : vector<1x1xf32>
    %264 = arith.mulf %263, %138 : vector<1x1xf32>
    %265 = arith.mulf %192, %234 : vector<1x1xf32>
    %266 = arith.subf %264, %265 : vector<1x1xf32>
    %267 = arith.mulf %266, %13 : vector<1x1xf32>
    %268 = arith.subf %267, %37 : vector<1x1xf32>
    %cst_53 = arith.constant 0.000000e+00 : f32
    %269 = vector.broadcast %cst_53 : f32 to vector<1x1xf32>
    %270 = arith.subf %269, %1 : vector<1x1xf32>
    %271 = arith.mulf %270, %197 : vector<1x1xf32>
    %272 = arith.mulf %3, %254 : vector<1x1xf32>
    %273 = arith.subf %271, %272 : vector<1x1xf32>
    %274 = arith.mulf %9, %39 : vector<1x1xf32>
    %275 = arith.addf %273, %274 : vector<1x1xf32>
    %cst_54 = arith.constant 0.000000e+00 : f32
    %276 = vector.broadcast %cst_54 : f32 to vector<1x1xf32>
    %277 = arith.subf %276, %1 : vector<1x1xf32>
    %278 = arith.mulf %277, %201 : vector<1x1xf32>
    %279 = arith.mulf %3, %261 : vector<1x1xf32>
    %280 = arith.subf %278, %279 : vector<1x1xf32>
    %281 = arith.mulf %9, %41 : vector<1x1xf32>
    %282 = arith.addf %280, %281 : vector<1x1xf32>
    %cst_55 = arith.constant 0.000000e+00 : f32
    %283 = vector.broadcast %cst_55 : f32 to vector<1x1xf32>
    %284 = arith.subf %283, %1 : vector<1x1xf32>
    %285 = arith.mulf %284, %204 : vector<1x1xf32>
    %286 = arith.mulf %3, %268 : vector<1x1xf32>
    %287 = arith.subf %285, %286 : vector<1x1xf32>
    %288 = arith.mulf %9, %43 : vector<1x1xf32>
    %289 = arith.addf %287, %288 : vector<1x1xf32>
    %290 = arith.mulf %170, %170 : vector<1x1xf32>
    %291 = arith.mulf %177, %177 : vector<1x1xf32>
    %292 = arith.addf %290, %291 : vector<1x1xf32>
    %293 = arith.mulf %185, %185 : vector<1x1xf32>
    %294 = arith.addf %292, %293 : vector<1x1xf32>
    %295 = math.rsqrt %294 : vector<1x1xf32>
    %cst_56 = arith.constant -1.000000e+00 : f32
    %296 = vector.broadcast %cst_56 : f32 to vector<1x1xf32>
    %297 = arith.mulf %296, %295 : vector<1x1xf32>
    %298 = arith.mulf %297, %170 : vector<1x1xf32>
    %299 = arith.mulf %297, %177 : vector<1x1xf32>
    %300 = arith.mulf %297, %185 : vector<1x1xf32>
    %301 = arith.mulf %211, %211 : vector<1x1xf32>
    %302 = arith.mulf %218, %218 : vector<1x1xf32>
    %303 = arith.addf %301, %302 : vector<1x1xf32>
    %304 = arith.mulf %225, %225 : vector<1x1xf32>
    %305 = arith.addf %303, %304 : vector<1x1xf32>
    %306 = math.rsqrt %305 : vector<1x1xf32>
    %cst_57 = arith.constant -1.000000e+00 : f32
    %307 = vector.broadcast %cst_57 : f32 to vector<1x1xf32>
    %308 = arith.mulf %307, %306 : vector<1x1xf32>
    %309 = arith.mulf %308, %211 : vector<1x1xf32>
    %310 = arith.mulf %308, %218 : vector<1x1xf32>
    %311 = arith.mulf %308, %225 : vector<1x1xf32>
    %312 = arith.mulf %275, %275 : vector<1x1xf32>
    %313 = arith.mulf %282, %282 : vector<1x1xf32>
    %314 = arith.addf %312, %313 : vector<1x1xf32>
    %315 = arith.mulf %289, %289 : vector<1x1xf32>
    %316 = arith.addf %314, %315 : vector<1x1xf32>
    %317 = math.rsqrt %316 : vector<1x1xf32>
    %cst_58 = arith.constant -1.000000e+00 : f32
    %318 = vector.broadcast %cst_58 : f32 to vector<1x1xf32>
    %319 = arith.mulf %318, %317 : vector<1x1xf32>
    %320 = arith.mulf %319, %275 : vector<1x1xf32>
    %321 = arith.mulf %319, %282 : vector<1x1xf32>
    %322 = arith.mulf %319, %289 : vector<1x1xf32>
    %323 = arith.mulf %299, %49 : vector<1x1xf32>
    %324 = arith.mulf %300, %47 : vector<1x1xf32>
    %325 = arith.subf %323, %324 : vector<1x1xf32>
    %326 = arith.mulf %300, %45 : vector<1x1xf32>
    %327 = arith.mulf %298, %49 : vector<1x1xf32>
    %328 = arith.subf %326, %327 : vector<1x1xf32>
    %329 = arith.mulf %298, %47 : vector<1x1xf32>
    %330 = arith.mulf %299, %45 : vector<1x1xf32>
    %331 = arith.subf %329, %330 : vector<1x1xf32>
    %332 = arith.mulf %310, %49 : vector<1x1xf32>
    %333 = arith.mulf %311, %47 : vector<1x1xf32>
    %334 = arith.subf %332, %333 : vector<1x1xf32>
    %335 = arith.mulf %311, %45 : vector<1x1xf32>
    %336 = arith.mulf %309, %49 : vector<1x1xf32>
    %337 = arith.subf %335, %336 : vector<1x1xf32>
    %338 = arith.mulf %309, %47 : vector<1x1xf32>
    %339 = arith.mulf %310, %45 : vector<1x1xf32>
    %340 = arith.subf %338, %339 : vector<1x1xf32>
    %341 = arith.mulf %299, %55 : vector<1x1xf32>
    %342 = arith.mulf %300, %53 : vector<1x1xf32>
    %343 = arith.subf %341, %342 : vector<1x1xf32>
    %344 = arith.mulf %300, %51 : vector<1x1xf32>
    %345 = arith.mulf %298, %55 : vector<1x1xf32>
    %346 = arith.subf %344, %345 : vector<1x1xf32>
    %347 = arith.mulf %298, %53 : vector<1x1xf32>
    %348 = arith.mulf %299, %51 : vector<1x1xf32>
    %349 = arith.subf %347, %348 : vector<1x1xf32>
    %350 = arith.addf %334, %343 : vector<1x1xf32>
    %351 = arith.addf %337, %346 : vector<1x1xf32>
    %352 = arith.addf %340, %349 : vector<1x1xf32>
    %353 = arith.mulf %321, %49 : vector<1x1xf32>
    %354 = arith.mulf %322, %47 : vector<1x1xf32>
    %355 = arith.subf %353, %354 : vector<1x1xf32>
    %356 = arith.mulf %322, %45 : vector<1x1xf32>
    %357 = arith.mulf %320, %49 : vector<1x1xf32>
    %358 = arith.subf %356, %357 : vector<1x1xf32>
    %359 = arith.mulf %320, %47 : vector<1x1xf32>
    %360 = arith.mulf %321, %45 : vector<1x1xf32>
    %361 = arith.subf %359, %360 : vector<1x1xf32>
    %362 = arith.mulf %310, %55 : vector<1x1xf32>
    %363 = arith.mulf %311, %53 : vector<1x1xf32>
    %364 = arith.subf %362, %363 : vector<1x1xf32>
    %365 = arith.mulf %311, %51 : vector<1x1xf32>
    %366 = arith.mulf %309, %55 : vector<1x1xf32>
    %367 = arith.subf %365, %366 : vector<1x1xf32>
    %368 = arith.mulf %309, %53 : vector<1x1xf32>
    %369 = arith.mulf %310, %51 : vector<1x1xf32>
    %370 = arith.subf %368, %369 : vector<1x1xf32>
    %cst_59 = arith.constant 2.000000e+00 : f32
    %371 = vector.broadcast %cst_59 : f32 to vector<1x1xf32>
    %372 = arith.mulf %371, %364 : vector<1x1xf32>
    %cst_60 = arith.constant 2.000000e+00 : f32
    %373 = vector.broadcast %cst_60 : f32 to vector<1x1xf32>
    %374 = arith.mulf %373, %367 : vector<1x1xf32>
    %cst_61 = arith.constant 2.000000e+00 : f32
    %375 = vector.broadcast %cst_61 : f32 to vector<1x1xf32>
    %376 = arith.mulf %375, %370 : vector<1x1xf32>
    %377 = arith.addf %355, %372 : vector<1x1xf32>
    %378 = arith.addf %358, %374 : vector<1x1xf32>
    %379 = arith.addf %361, %376 : vector<1x1xf32>
    %380 = arith.mulf %299, %61 : vector<1x1xf32>
    %381 = arith.mulf %300, %59 : vector<1x1xf32>
    %382 = arith.subf %380, %381 : vector<1x1xf32>
    %383 = arith.mulf %300, %57 : vector<1x1xf32>
    %384 = arith.mulf %298, %61 : vector<1x1xf32>
    %385 = arith.subf %383, %384 : vector<1x1xf32>
    %386 = arith.mulf %298, %59 : vector<1x1xf32>
    %387 = arith.mulf %299, %57 : vector<1x1xf32>
    %388 = arith.subf %386, %387 : vector<1x1xf32>
    %389 = arith.addf %377, %382 : vector<1x1xf32>
    %390 = arith.addf %378, %385 : vector<1x1xf32>
    %391 = arith.addf %379, %388 : vector<1x1xf32>
    %392 = arith.mulf %325, %325 : vector<1x1xf32>
    %393 = arith.mulf %328, %328 : vector<1x1xf32>
    %394 = arith.addf %392, %393 : vector<1x1xf32>
    %395 = arith.mulf %331, %331 : vector<1x1xf32>
    %396 = arith.addf %394, %395 : vector<1x1xf32>
    %397 = math.rsqrt %396 : vector<1x1xf32>
    %cst_62 = arith.constant 1.000000e+00 : f32
    %398 = vector.broadcast %cst_62 : f32 to vector<1x1xf32>
    %399 = arith.mulf %398, %397 : vector<1x1xf32>
    %400 = arith.mulf %399, %325 : vector<1x1xf32>
    %401 = arith.mulf %399, %328 : vector<1x1xf32>
    %402 = arith.mulf %399, %331 : vector<1x1xf32>
    %403 = arith.mulf %350, %350 : vector<1x1xf32>
    %404 = arith.mulf %351, %351 : vector<1x1xf32>
    %405 = arith.addf %403, %404 : vector<1x1xf32>
    %406 = arith.mulf %352, %352 : vector<1x1xf32>
    %407 = arith.addf %405, %406 : vector<1x1xf32>
    %408 = math.rsqrt %407 : vector<1x1xf32>
    %409 = arith.mulf %408, %400 : vector<1x1xf32>
    %410 = arith.mulf %408, %401 : vector<1x1xf32>
    %411 = arith.mulf %408, %402 : vector<1x1xf32>
    %412 = arith.mulf %389, %389 : vector<1x1xf32>
    %413 = arith.mulf %390, %390 : vector<1x1xf32>
    %414 = arith.addf %412, %413 : vector<1x1xf32>
    %415 = arith.mulf %391, %391 : vector<1x1xf32>
    %416 = arith.addf %414, %415 : vector<1x1xf32>
    %417 = math.rsqrt %416 : vector<1x1xf32>
    %418 = arith.mulf %417, %400 : vector<1x1xf32>
    %419 = arith.mulf %417, %401 : vector<1x1xf32>
    %420 = arith.mulf %417, %402 : vector<1x1xf32>
    %421 = arith.mulf %401, %300 : vector<1x1xf32>
    %422 = arith.mulf %402, %299 : vector<1x1xf32>
    %423 = arith.subf %421, %422 : vector<1x1xf32>
    %424 = arith.mulf %402, %298 : vector<1x1xf32>
    %425 = arith.mulf %400, %300 : vector<1x1xf32>
    %426 = arith.subf %424, %425 : vector<1x1xf32>
    %427 = arith.mulf %400, %299 : vector<1x1xf32>
    %428 = arith.mulf %401, %298 : vector<1x1xf32>
    %429 = arith.subf %427, %428 : vector<1x1xf32>
    %430 = arith.mulf %400, %400 : vector<1x1xf32>
    %431 = arith.mulf %401, %401 : vector<1x1xf32>
    %432 = arith.addf %430, %431 : vector<1x1xf32>
    %433 = arith.mulf %402, %402 : vector<1x1xf32>
    %434 = arith.addf %432, %433 : vector<1x1xf32>
    %435 = math.rsqrt %434 : vector<1x1xf32>
    %cst_63 = arith.constant 1.000000e+00 : f32
    %436 = vector.broadcast %cst_63 : f32 to vector<1x1xf32>
    %437 = arith.mulf %436, %435 : vector<1x1xf32>
    %438 = arith.mulf %437, %400 : vector<1x1xf32>
    %439 = arith.mulf %437, %401 : vector<1x1xf32>
    %440 = arith.mulf %437, %402 : vector<1x1xf32>
    %441 = arith.mulf %438, %309 : vector<1x1xf32>
    %442 = arith.mulf %439, %310 : vector<1x1xf32>
    %443 = arith.addf %441, %442 : vector<1x1xf32>
    %444 = arith.mulf %440, %311 : vector<1x1xf32>
    %445 = arith.addf %443, %444 : vector<1x1xf32>
    %cst_64 = arith.constant 0.000000e+00 : f32
    %446 = vector.broadcast %cst_64 : f32 to vector<1x1xf32>
    %447 = arith.subf %446, %445 : vector<1x1xf32>
    %448 = arith.mulf %423, %309 : vector<1x1xf32>
    %449 = arith.mulf %426, %310 : vector<1x1xf32>
    %450 = arith.addf %448, %449 : vector<1x1xf32>
    %451 = arith.mulf %429, %311 : vector<1x1xf32>
    %452 = arith.addf %450, %451 : vector<1x1xf32>
    %453 = arith.mulf %423, %409 : vector<1x1xf32>
    %454 = arith.mulf %426, %410 : vector<1x1xf32>
    %455 = arith.addf %453, %454 : vector<1x1xf32>
    %456 = arith.mulf %429, %411 : vector<1x1xf32>
    %457 = arith.addf %455, %456 : vector<1x1xf32>
    %cst_65 = arith.constant 0.000000e+00 : f32
    %458 = vector.broadcast %cst_65 : f32 to vector<1x1xf32>
    %459 = arith.subf %458, %457 : vector<1x1xf32>
    %460 = arith.mulf %438, %320 : vector<1x1xf32>
    %461 = arith.mulf %439, %321 : vector<1x1xf32>
    %462 = arith.addf %460, %461 : vector<1x1xf32>
    %463 = arith.mulf %440, %322 : vector<1x1xf32>
    %464 = arith.addf %462, %463 : vector<1x1xf32>
    %465 = arith.mulf %452, %459 : vector<1x1xf32>
    %466 = arith.subf %464, %465 : vector<1x1xf32>
    %cst_66 = arith.constant 0.000000e+00 : f32
    %467 = vector.broadcast %cst_66 : f32 to vector<1x1xf32>
    %468 = arith.subf %467, %466 : vector<1x1xf32>
    %469 = arith.mulf %423, %320 : vector<1x1xf32>
    %470 = arith.mulf %426, %321 : vector<1x1xf32>
    %471 = arith.addf %469, %470 : vector<1x1xf32>
    %472 = arith.mulf %429, %322 : vector<1x1xf32>
    %473 = arith.addf %471, %472 : vector<1x1xf32>
    %474 = arith.mulf %447, %459 : vector<1x1xf32>
    %475 = arith.subf %473, %474 : vector<1x1xf32>
    %476 = arith.mulf %423, %418 : vector<1x1xf32>
    %477 = arith.mulf %426, %419 : vector<1x1xf32>
    %478 = arith.addf %476, %477 : vector<1x1xf32>
    %479 = arith.mulf %429, %420 : vector<1x1xf32>
    %480 = arith.addf %478, %479 : vector<1x1xf32>
    %481 = arith.mulf %447, %452 : vector<1x1xf32>
    %482 = arith.subf %480, %481 : vector<1x1xf32>
    %cst_67 = arith.constant 0.000000e+00 : f32
    %483 = vector.broadcast %cst_67 : f32 to vector<1x1xf32>
    %484 = arith.subf %483, %482 : vector<1x1xf32>
    %485 = arith.mulf %438, %104 : vector<1x1xf32>
    %486 = arith.mulf %439, %121 : vector<1x1xf32>
    %487 = arith.addf %485, %486 : vector<1x1xf32>
    %488 = arith.mulf %440, %138 : vector<1x1xf32>
    %489 = arith.addf %487, %488 : vector<1x1xf32>
    %490 = arith.mulf %99, %298 : vector<1x1xf32>
    %491 = arith.mulf %116, %299 : vector<1x1xf32>
    %492 = arith.addf %490, %491 : vector<1x1xf32>
    %493 = arith.mulf %131, %300 : vector<1x1xf32>
    %494 = arith.addf %492, %493 : vector<1x1xf32>
    %495 = arith.subf %489, %494 : vector<1x1xf32>
    %496 = arith.mulf %423, %104 : vector<1x1xf32>
    %497 = arith.mulf %426, %121 : vector<1x1xf32>
    %498 = arith.addf %496, %497 : vector<1x1xf32>
    %499 = arith.mulf %429, %138 : vector<1x1xf32>
    %500 = arith.addf %498, %499 : vector<1x1xf32>
    %501 = arith.mulf %94, %298 : vector<1x1xf32>
    %502 = arith.mulf %109, %299 : vector<1x1xf32>
    %503 = arith.addf %501, %502 : vector<1x1xf32>
    %504 = arith.mulf %126, %300 : vector<1x1xf32>
    %505 = arith.addf %503, %504 : vector<1x1xf32>
    %506 = arith.subf %500, %505 : vector<1x1xf32>
    %507 = arith.mulf %423, %99 : vector<1x1xf32>
    %508 = arith.mulf %426, %116 : vector<1x1xf32>
    %509 = arith.addf %507, %508 : vector<1x1xf32>
    %510 = arith.mulf %429, %131 : vector<1x1xf32>
    %511 = arith.addf %509, %510 : vector<1x1xf32>
    %512 = arith.mulf %94, %438 : vector<1x1xf32>
    %513 = arith.mulf %109, %439 : vector<1x1xf32>
    %514 = arith.addf %512, %513 : vector<1x1xf32>
    %515 = arith.mulf %126, %440 : vector<1x1xf32>
    %516 = arith.addf %514, %515 : vector<1x1xf32>
    %517 = arith.subf %511, %516 : vector<1x1xf32>
    %cst_68 = arith.constant -5.000000e-01 : f32
    %518 = vector.broadcast %cst_68 : f32 to vector<1x1xf32>
    %519 = arith.mulf %518, %495 : vector<1x1xf32>
    %cst_69 = arith.constant 5.000000e-01 : f32
    %520 = vector.broadcast %cst_69 : f32 to vector<1x1xf32>
    %521 = arith.mulf %520, %506 : vector<1x1xf32>
    %cst_70 = arith.constant -5.000000e-01 : f32
    %522 = vector.broadcast %cst_70 : f32 to vector<1x1xf32>
    %523 = arith.mulf %522, %517 : vector<1x1xf32>
    %524 = arith.mulf %423, %447 : vector<1x1xf32>
    %525 = arith.mulf %438, %452 : vector<1x1xf32>
    %526 = arith.addf %524, %525 : vector<1x1xf32>
    %527 = arith.mulf %298, %459 : vector<1x1xf32>
    %528 = arith.addf %526, %527 : vector<1x1xf32>
    %529 = arith.mulf %426, %447 : vector<1x1xf32>
    %530 = arith.mulf %439, %452 : vector<1x1xf32>
    %531 = arith.addf %529, %530 : vector<1x1xf32>
    %532 = arith.mulf %299, %459 : vector<1x1xf32>
    %533 = arith.addf %531, %532 : vector<1x1xf32>
    %534 = arith.mulf %429, %447 : vector<1x1xf32>
    %535 = arith.mulf %440, %452 : vector<1x1xf32>
    %536 = arith.addf %534, %535 : vector<1x1xf32>
    %537 = arith.mulf %300, %459 : vector<1x1xf32>
    %538 = arith.addf %536, %537 : vector<1x1xf32>
    %539 = arith.mulf %94, %528 : vector<1x1xf32>
    %540 = arith.mulf %109, %533 : vector<1x1xf32>
    %541 = arith.addf %539, %540 : vector<1x1xf32>
    %542 = arith.mulf %126, %538 : vector<1x1xf32>
    %543 = arith.addf %541, %542 : vector<1x1xf32>
    %544 = arith.mulf %99, %528 : vector<1x1xf32>
    %545 = arith.mulf %116, %533 : vector<1x1xf32>
    %546 = arith.addf %544, %545 : vector<1x1xf32>
    %547 = arith.mulf %131, %538 : vector<1x1xf32>
    %548 = arith.addf %546, %547 : vector<1x1xf32>
    %549 = arith.mulf %104, %528 : vector<1x1xf32>
    %550 = arith.mulf %121, %533 : vector<1x1xf32>
    %551 = arith.addf %549, %550 : vector<1x1xf32>
    %552 = arith.mulf %138, %538 : vector<1x1xf32>
    %553 = arith.addf %551, %552 : vector<1x1xf32>
    %554 = arith.subf %75, %543 : vector<1x1xf32>
    %555 = arith.subf %77, %548 : vector<1x1xf32>
    %556 = arith.subf %79, %553 : vector<1x1xf32>
    %557 = arith.mulf %140, %75 : vector<1x1xf32>
    %558 = arith.mulf %142, %77 : vector<1x1xf32>
    %559 = arith.addf %557, %558 : vector<1x1xf32>
    %560 = arith.mulf %144, %79 : vector<1x1xf32>
    %561 = arith.addf %559, %560 : vector<1x1xf32>
    %562 = arith.mulf %146, %75 : vector<1x1xf32>
    %563 = arith.mulf %148, %77 : vector<1x1xf32>
    %564 = arith.addf %562, %563 : vector<1x1xf32>
    %565 = arith.mulf %150, %79 : vector<1x1xf32>
    %566 = arith.addf %564, %565 : vector<1x1xf32>
    %567 = arith.mulf %152, %75 : vector<1x1xf32>
    %568 = arith.mulf %154, %77 : vector<1x1xf32>
    %569 = arith.addf %567, %568 : vector<1x1xf32>
    %570 = arith.mulf %156, %79 : vector<1x1xf32>
    %571 = arith.addf %569, %570 : vector<1x1xf32>
    %572 = arith.mulf %77, %571 : vector<1x1xf32>
    %573 = arith.mulf %79, %566 : vector<1x1xf32>
    %574 = arith.subf %572, %573 : vector<1x1xf32>
    %575 = arith.mulf %79, %561 : vector<1x1xf32>
    %576 = arith.mulf %75, %571 : vector<1x1xf32>
    %577 = arith.subf %575, %576 : vector<1x1xf32>
    %578 = arith.mulf %75, %566 : vector<1x1xf32>
    %579 = arith.mulf %77, %561 : vector<1x1xf32>
    %580 = arith.subf %578, %579 : vector<1x1xf32>
    %581 = arith.mulf %5, %519 : vector<1x1xf32>
    %582 = arith.mulf %7, %554 : vector<1x1xf32>
    %583 = arith.addf %581, %582 : vector<1x1xf32>
    %cst_71 = arith.constant 0.000000e+00 : f32
    %584 = vector.broadcast %cst_71 : f32 to vector<1x1xf32>
    %585 = arith.subf %584, %583 : vector<1x1xf32>
    %586 = arith.addf %585, %574 : vector<1x1xf32>
    %587 = arith.mulf %5, %521 : vector<1x1xf32>
    %588 = arith.mulf %7, %555 : vector<1x1xf32>
    %589 = arith.addf %587, %588 : vector<1x1xf32>
    %cst_72 = arith.constant 0.000000e+00 : f32
    %590 = vector.broadcast %cst_72 : f32 to vector<1x1xf32>
    %591 = arith.subf %590, %589 : vector<1x1xf32>
    %592 = arith.addf %591, %577 : vector<1x1xf32>
    %593 = arith.mulf %5, %523 : vector<1x1xf32>
    %594 = arith.mulf %7, %556 : vector<1x1xf32>
    %595 = arith.addf %593, %594 : vector<1x1xf32>
    %cst_73 = arith.constant 0.000000e+00 : f32
    %596 = vector.broadcast %cst_73 : f32 to vector<1x1xf32>
    %597 = arith.subf %596, %595 : vector<1x1xf32>
    %598 = arith.addf %597, %580 : vector<1x1xf32>
    %599 = arith.mulf %423, %468 : vector<1x1xf32>
    %600 = arith.mulf %438, %475 : vector<1x1xf32>
    %601 = arith.addf %599, %600 : vector<1x1xf32>
    %602 = arith.mulf %298, %484 : vector<1x1xf32>
    %603 = arith.addf %601, %602 : vector<1x1xf32>
    %604 = arith.mulf %426, %468 : vector<1x1xf32>
    %605 = arith.mulf %439, %475 : vector<1x1xf32>
    %606 = arith.addf %604, %605 : vector<1x1xf32>
    %607 = arith.mulf %299, %484 : vector<1x1xf32>
    %608 = arith.addf %606, %607 : vector<1x1xf32>
    %609 = arith.mulf %429, %468 : vector<1x1xf32>
    %610 = arith.mulf %440, %475 : vector<1x1xf32>
    %611 = arith.addf %609, %610 : vector<1x1xf32>
    %612 = arith.mulf %300, %484 : vector<1x1xf32>
    %613 = arith.addf %611, %612 : vector<1x1xf32>
    %614 = arith.mulf %94, %603 : vector<1x1xf32>
    %615 = arith.mulf %109, %608 : vector<1x1xf32>
    %616 = arith.addf %614, %615 : vector<1x1xf32>
    %617 = arith.mulf %126, %613 : vector<1x1xf32>
    %618 = arith.addf %616, %617 : vector<1x1xf32>
    %619 = arith.mulf %99, %603 : vector<1x1xf32>
    %620 = arith.mulf %116, %608 : vector<1x1xf32>
    %621 = arith.addf %619, %620 : vector<1x1xf32>
    %622 = arith.mulf %131, %613 : vector<1x1xf32>
    %623 = arith.addf %621, %622 : vector<1x1xf32>
    %624 = arith.mulf %104, %603 : vector<1x1xf32>
    %625 = arith.mulf %121, %608 : vector<1x1xf32>
    %626 = arith.addf %624, %625 : vector<1x1xf32>
    %627 = arith.mulf %138, %613 : vector<1x1xf32>
    %628 = arith.addf %626, %627 : vector<1x1xf32>
    %629 = arith.subf %543, %618 : vector<1x1xf32>
    %630 = arith.subf %548, %623 : vector<1x1xf32>
    %631 = arith.subf %553, %628 : vector<1x1xf32>
    %632 = arith.mulf %77, %631 : vector<1x1xf32>
    %633 = arith.mulf %79, %630 : vector<1x1xf32>
    %634 = arith.subf %632, %633 : vector<1x1xf32>
    %635 = arith.mulf %79, %629 : vector<1x1xf32>
    %636 = arith.mulf %75, %631 : vector<1x1xf32>
    %637 = arith.subf %635, %636 : vector<1x1xf32>
    %638 = arith.mulf %75, %630 : vector<1x1xf32>
    %639 = arith.mulf %77, %629 : vector<1x1xf32>
    %640 = arith.subf %638, %639 : vector<1x1xf32>
    %641 = arith.mulf %140, %634 : vector<1x1xf32>
    %642 = arith.mulf %142, %637 : vector<1x1xf32>
    %643 = arith.addf %641, %642 : vector<1x1xf32>
    %644 = arith.mulf %144, %640 : vector<1x1xf32>
    %645 = arith.addf %643, %644 : vector<1x1xf32>
    %646 = arith.mulf %146, %634 : vector<1x1xf32>
    %647 = arith.mulf %148, %637 : vector<1x1xf32>
    %648 = arith.addf %646, %647 : vector<1x1xf32>
    %649 = arith.mulf %150, %640 : vector<1x1xf32>
    %650 = arith.addf %648, %649 : vector<1x1xf32>
    %651 = arith.mulf %152, %634 : vector<1x1xf32>
    %652 = arith.mulf %154, %637 : vector<1x1xf32>
    %653 = arith.addf %651, %652 : vector<1x1xf32>
    %654 = arith.mulf %156, %640 : vector<1x1xf32>
    %655 = arith.addf %653, %654 : vector<1x1xf32>
    %656 = arith.subf %586, %645 : vector<1x1xf32>
    %657 = arith.subf %592, %650 : vector<1x1xf32>
    %658 = arith.subf %598, %655 : vector<1x1xf32>
    %cst_74 = arith.constant 0.000000e+00 : f32
    %659 = vector.broadcast %cst_74 : f32 to vector<1x1xf32>
    %660 = arith.maximumf %192, %659 : vector<1x1xf32>
    %661 = tpu.iota {dimensions = array<i32: 1>} : vector<1x4xi32>
    %c0_i32 = arith.constant 0 : i32
    %662 = vector.broadcast %c0_i32 : i32 to vector<1x4xi32>
    %663 = arith.cmpi eq, %661, %662 : vector<1x4xi32>
    %cst_75 = arith.constant 0.000000e+00 : f32
    %664 = vector.shape_cast %660 : vector<1x1xf32> to vector<1x1xf32>
    %665 = vector.broadcast %664 : vector<1x1xf32> to vector<1x4xf32>
    %666 = vector.broadcast %cst_75 : f32 to vector<1x4xf32>
    %667 = arith.select %663, %665, %666 : vector<1x4xi1>, vector<1x4xf32>
    %c1_i32 = arith.constant 1 : i32
    %668 = vector.broadcast %c1_i32 : i32 to vector<1x4xi32>
    %669 = arith.cmpi eq, %661, %668 : vector<1x4xi32>
    %670 = vector.shape_cast %656 : vector<1x1xf32> to vector<1x1xf32>
    %671 = vector.broadcast %670 : vector<1x1xf32> to vector<1x4xf32>
    %672 = arith.select %669, %671, %667 : vector<1x4xi1>, vector<1x4xf32>
    %c2_i32 = arith.constant 2 : i32
    %673 = vector.broadcast %c2_i32 : i32 to vector<1x4xi32>
    %674 = arith.cmpi eq, %661, %673 : vector<1x4xi32>
    %675 = vector.shape_cast %657 : vector<1x1xf32> to vector<1x1xf32>
    %676 = vector.broadcast %675 : vector<1x1xf32> to vector<1x4xf32>
    %677 = arith.select %674, %676, %672 : vector<1x4xi1>, vector<1x4xf32>
    %c3_i32 = arith.constant 3 : i32
    %678 = vector.broadcast %c3_i32 : i32 to vector<1x4xi32>
    %679 = arith.cmpi eq, %661, %678 : vector<1x4xi32>
    %680 = vector.shape_cast %658 : vector<1x1xf32> to vector<1x1xf32>
    %681 = vector.broadcast %680 : vector<1x1xf32> to vector<1x4xf32>
    %682 = arith.select %679, %681, %677 : vector<1x4xi1>, vector<1x4xf32>
    %c0_76 = arith.constant 0 : index
    %c0_77 = arith.constant 0 : index
    %683 = vector.load %arg4[%c0_76, %c0_77] : memref<1x4xf32, #tpu.memory_space<vmem>>, vector<1x4xf32>
    tpu.vector_store %arg4[%c0_76, %c0_77], %682 {strides = array<i32>} : memref<1x4xf32, #tpu.memory_space<vmem>>, vector<1x4xf32>,
    return
  }
}

</mosaic_0001>

<bundles_post_ra>
// kernel: tpu_custom_call.1
= control target key start
LH: loop header
LB: loop body
LE: loop exit
PB: predicated region body
PF: predicated region fallthrough
CT: control target
= control target key end

     0   :  { %9 = vsyncpa [#allocation4], 0  ;;  %s1725_s0 = inlined_call_operand.hbm [shape: f32[13], index: 0, kind: input, shape index: {}]   ;;  %s1726_s1 = inlined_call_operand.hbm [shape: f32[24], index: 1, kind: input, shape index: {}]   ;;  %s1727_s2 = inlined_call_operand.vmem [shape: f32[6], index: 2, kind: input, shape index: {}]   ;;  %s1728_s3 = inlined_call_operand.vmem [shape: f32[9], index: 3, kind: input, shape index: {}]   ;;  %s1729_s4 = inlined_call_operand.hbm [shape: f32[1,4], index: 4, kind: output, shape index: {}]  }
   0x1   :  { %10 = vsyncpa [#allocation7], 0 }
   0x2   :  { %11 = vsyncpa [#allocation5], 0 }
   0x3   :  { %12 = vsyncpa [#allocation10], 0 }
   0x4   :  { %13 = vsyncpa [#allocation3], 0  ;;  %s19_s17 = sshll.u32 %s1725_s0, 4  ;;  %s28_s20 = sshll.u32 %s1726_s1, 4  ;;  %s20_s17 = int_to_ptr.hbm [resolvable:$true] %s19_s17  ;;  %s29_s20 = int_to_ptr.hbm [resolvable:$true] %s28_s20 }
   0x5   :  { %s921_s21 = smov [#allocation2]   ;;  %s922_s22 = smov [#allocation6]  }
   0x6   :  { %22 = dma.hbm_to_smem %s20_s17, 16, %s921_s21, [#allocation4]  }
   0x7   :  { %31 = dma.hbm_to_smem %s29_s20, 16, %s922_s22, [#allocation7]  }
   0x8   :  { %s37_s25 = sshll.u32 %s1727_s2, 4  ;;  %s46_s28 = sshll.u32 %s1728_s3, 4  ;;  %s38_s25 = int_to_ptr.vmem [resolvable:$true] %s37_s25  ;;  %s47_s28 = int_to_ptr.vmem [resolvable:$true] %s46_s28 }
   0x9   :  { %s923_s0 = smov [#allocation8]   ;;  %s924_s29 = smov [#allocation9]  }
   0xa   :  { %40 = dma.vmem_to_smem %s38_s25, 16, %s923_s0, [#allocation5]  }
   0xb   :  { %49 = dma.vmem_to_smem %s47_s28, 16, %s924_s29, [#allocation10]  }
   0xc   :  { %911 = dma.done.wait [#allocation4], 16  }
   0xd   :  { %912 = vsyncadd [#allocation4], 4294967280 }
   0xe   :  { %913 = dma.done.wait [#allocation7], 16  }
   0xf   :  { %914 = vsyncadd [#allocation7], 4294967280 }
  0x10   :  { %915 = dma.done.wait [#allocation5], 16  }
  0x11   :  { %916 = vsyncadd [#allocation5], 4294967280 }
  0x12   :  { %917 = dma.done.wait [#allocation10], 16  }
  0x13   :  { %918 = vsyncadd [#allocation10], 4294967280 }
  0x14   :  { %66 = sfence }
  0x15   :  { %s963_s1 = sld [smem:[#allocation8]] }
  0x16   :  { %s773_s2 = sld [smem:[#allocation8 + $0x4]] }
  0x17   :  { %s965_s30 = sld [smem:[#allocation8 + $0x1]] }
  0x18   :  { %s94_s3 = sld [smem:[#allocation6]] }
  0x19   :  { %s967_s5 = sld [smem:[#allocation6 + $0x1]] }
  0x1a   :  { %s969_s6 = sld [smem:[#allocation6 + $0x2]] }
  0x1b   :  { %s777_s7 = sld [smem:[#allocation6 + $0x3]]  ;;  %v995_v14 = vstv %s963_s1 }
  0x1c   :  { %s971_s8 = sld [smem:[#allocation6 + $0x4]]  ;;  %v975_v0 = vstv %s773_s2 }
  0x1d   :  { %s973_s9 = sld [smem:[#allocation6 + $0x5]]  ;;  %823 = vrcp.f32 %v975_v0  ;;  %v998_v15 = vstv %s965_s30  ;;  %vm84_vm0 = vweird.f32 %v975_v0  ;;  %v88_v57 = vand.u32 2147483647, %v975_v0 }
  0x1e   :  { %s142_s10 = sld [smem:[#allocation2]]  ;;  %v95_v1 = vstv %s94_s3  ;;  %v90_v62 = vand.u32 2147483648, %v975_v0 }
  0x1f   :  { %s798_s11 = sld [smem:[#allocation2 + $0x1]]  ;;  %v97_v4 = vstv %s967_s5  ;;  %vm89_vm3 = vcmp.eq.f32.partialorder %v88_v57, 8.507059e+37 }
  0x20   :  { %s977_s12 = sld [smem:[#allocation2 + $0x2]]  ;;  %v99_v8 = vstv %s969_s6 }
  0x21   :  { %s800_s13 = sld [smem:[#allocation2 + $0x7]]  ;;  %v101_v2 = vstv %s777_s7 }
  0x22   :  { %s801_s14 = sld [smem:[#allocation2 + $0x8]]  ;;  %v103_v5 = vstv %s971_s8 }
  0x23   :  { %s980_s15 = sld [smem:[#allocation2 + $0x9]]  ;;  %v988_v7 = vpop.eup %823  ;;  %v105_v19 = vstv %s973_s9 }
  0x24   :  { %s982_s16 = sld [smem:[#allocation6 + $0x6]]  ;;  %v143_v3 = vstv %s142_s10  ;;  %v80_v18 = vmul.f32 %v988_v7, %v975_v0  ;;  %vm85_vm1 = vweird.f32 %v988_v7 }
  0x25   :  { %s986_s17 = sld [smem:[#allocation6 + $0x7]]  ;;  %v145_v6 = vstv %s798_s11  ;;  %v216_v12 = vsub.f32 %v143_v3, %v95_v1  ;;  %vm1058_vm2 = vmor %vm84_vm0, %vm85_vm1 }
  0x26   :  { %s806_s18 = sld [smem:[#allocation2 + $0x3]]  ;;  %v147_v10 = vstv %s977_s12  ;;  %v217_v16 = vsub.f32 %v145_v6, %v97_v4  ;;  %v81_v28 = vsub.f32 1.0, %v80_v18 }
  0x27   :  { %v149_v9 = vstv %s800_s13  ;;  %s807_s19 = sld [smem:[#allocation2 + $0x4]]  ;;  %v218_v21 = vsub.f32 %v147_v10, %v99_v8  ;;  %v223_v22 = vmul.f32 %v216_v12, %v995_v14 }
  0x28   :  { %v151_v11 = vstv %s801_s14  ;;  %v992_v13 = vsub.f32 %v149_v9, %v101_v2  ;;  %s808_s20 = sld [smem:[#allocation2 + $0x5]]  ;;  %v229_v26 = vmul.f32 %v217_v16, %v995_v14  ;;  %v82_v48 = vmul.f32 %v988_v7, %v81_v28 }
  0x29   :  { %v1000_v17 = vsub.f32 %v151_v11, %v103_v5  ;;  %v153_v20 = vstv %s980_s15  ;;  %s809_s21 = sld [smem:[#allocation2 + $0x6]]  ;;  %v235_v34 = vmul.f32 %v218_v21, %v995_v14 }
  0x2a   :  { %s1006_s22 = sld [smem:[#allocation8 + $0x5]]  ;;  %v224_v23 = vmul.f32 %v992_v13, %v998_v15  ;;  %v1013_v25 = vsub.f32 %v153_v20, %v105_v19  ;;  %v107_v29 = vstv %s982_s16  ;;  %v83_v61 = vadd.f32 %v988_v7, %v82_v48 }
  0x2b   :  { %s1011_s23 = sld [smem:[#allocation6 + $0x8]]  ;;  %v230_v27 = vmul.f32 %v1000_v17, %v998_v15  ;;  %v109_v43 = vstv %s986_s17  ;;  %v227_v50 = vmul.f32 %v107_v29, %v975_v0  ;;  %v91_v19 = vor.u32 1.1754944e-38, %v90_v62 }
  0x2c   :  { %v161_v24 = vstv %s806_s18  ;;  %v225_v38 = vadd.f32 %v224_v23, %v223_v22  ;;  %v236_v42 = vmul.f32 %v1013_v25, %v998_v15  ;;  %v233_v53 = vmul.f32 %v109_v43, %v975_v0  ;;  %s1064_s24 = sld [smem:[#allocation2 + $0xa]] }
  0x2d   :  { %v163_v30 = vstv %s807_s19  ;;  %v183_v33 = vmul.f32 %v161_v24, %v161_v24  ;;  %v231_v41 = vadd.f32 %v230_v27, %v229_v26  ;;  %s1068_s25 = sld [smem:[#allocation2 + $0xb]]  ;;  %v87_v18 = vsel %vm1058_vm2, %v988_v7, %v83_v61 }
  0x2e   :  { %v165_v31 = vstv %s808_s20  ;;  %v168_v32 = vmul.f32 %v163_v30, %v163_v30  ;;  %v226_v49 = vsub.f32 0.0, %v225_v38  ;;  %v237_v54 = vadd.f32 %v236_v42, %v235_v34  ;;  %s1081_s26 = sld [smem:[#allocation6 + $0x9]] }
  0x2f   :  { %v167_v35 = vstv %s809_s21  ;;  %v1020_v36 = vmul.f32 %v165_v31, %v161_v24  ;;  %v1022_v37 = vmul.f32 %v165_v31, %v163_v30  ;;  %v232_v52 = vsub.f32 0.0, %v231_v41  ;;  %s1085_s27 = sld [smem:[#allocation6 + $0xa]] }
  0x30   :  { %v1024_v39 = vmul.f32 %v167_v35, %v163_v30  ;;  %v188_v40 = vmul.f32 %v167_v35, %v161_v24  ;;  %v195_v46 = vadd.f32 %v183_v33, %v168_v32  ;;  %v78_v47 = vstv %s1006_s22  ;;  %s1093_s28 = sld [smem:[#allocation6 + $0xb]] }
  0x31   :  { %v111_v51 = vstv %s1011_s23  ;;  %v169_v55 = vmul.f32 %v165_v31, %v165_v31  ;;  %v222_v60 = vmul.f32 %v78_v47, %v975_v0  ;;  %v1053_v63 = vadd.f32 %v227_v50, %v226_v49  ;;  %s1180_s0 = sld [smem:[#allocation6 + $0xf]]  ;;  %s925_s23 = smov [#allocation11]  }
  0x32   :  { %v179_v44 = vadd.f32 %v1024_v39, %v1020_v36  ;;  %v189_v45 = vsub.f32 %v1022_v37, %v188_v40  ;;  %v196_v59 = vmul.f32 2.0, %v195_v46  ;;  %v240_v1 = vmul.f32 %v111_v51, %v975_v0  ;;  %s1186_s29 = sld [smem:[#allocation6 + $0x10]] }
  0x33   :  { %v173_v3 = vmul.f32 %v163_v30, %v161_v24  ;;  %v174_v4 = vmul.f32 %v167_v35, %v165_v31  ;;  %v1062_v5 = vadd.f32 %v233_v53, %v232_v52  ;;  %v238_v6 = vsub.f32 0.0, %v237_v54  ;;  %s791_s1 = sld [smem:[#allocation6 + $0x11]] }
  0x34   :  { %v1043_v56 = vmul.f32 2.0, %v179_v44  ;;  %v1046_v58 = vmul.f32 2.0, %v189_v45  ;;  %v170_v8 = vadd.f32 %v169_v55, %v168_v32  ;;  %v184_v9 = vadd.f32 %v183_v33, %v169_v55  ;;  %s1207_s2 = sld [smem:[#allocation6 + $0xc]] }
  0x35   :  { %v1070_v11 = vsub.f32 1.0, %v196_v59  ;;  %v239_v12 = vsub.f32 %v238_v6, %v222_v60  ;;  %v175_v20 = vsub.f32 %v173_v3, %v174_v4  ;;  %v325_v23 = vmul.f32 %v1053_v63, %v1053_v63  ;;  %s1209_s30 = sld [smem:[#allocation6 + $0xd]] }
  0x36   :  { %v242_v10 = vmul.f32 %v1053_v63, %v1043_v56  ;;  %v243_v16 = vmul.f32 %v1062_v5, %v1046_v58  ;;  %v171_v24 = vmul.f32 2.0, %v170_v8  ;;  %v181_v26 = vadd.f32 %v174_v4, %v173_v3  ;;  %s1211_s3 = sld [smem:[#allocation6 + $0xe]] }
  0x37   :  { %v1077_v21 = vadd.f32 %v240_v1, %v239_v12  ;;  %v185_v27 = vmul.f32 2.0, %v184_v9  ;;  %v326_v28 = vmul.f32 %v1062_v5, %v1062_v5  ;;  %v1091_v31 = vsel %vm89_vm3, %v91_v19, %v87_v18  ;;  %s792_s5 = sld [smem:[#allocation6 + $0x12]] }
  0x38   :  { %v244_v22 = vadd.f32 %v243_v16, %v242_v10  ;;  %v1095_v33 = vmul.f32 2.0, %v175_v20  ;;  %v191_v34 = vsub.f32 %v1020_v36, %v1024_v39  ;;  %v193_v35 = vadd.f32 %v188_v40, %v1022_v37  ;;  %s1230_s6 = sld [smem:[#allocation6 + $0x13]] }
  0x39   :  { %v245_v7 = vmul.f32 %v1077_v21, %v1070_v11  ;;  %v328_v30 = vmul.f32 %v1077_v21, %v1077_v21  ;;  %v327_v32 = vadd.f32 %v326_v28, %v325_v23  ;;  %v1100_v41 = vsub.f32 1.0, %v171_v24  ;;  %s1253_s7 = sld [smem:[#allocation6 + $0x14]] }
  0x3a   :  { %v1102_v42 = vmul.f32 2.0, %v181_v26  ;;  %v1104_v44 = vsub.f32 1.0, %v185_v27  ;;  %v1107_v46 = vstv %s1064_s24  ;;  %v1110_v48 = vstv %s1068_s25  ;;  %s1348_s8 = sld [smem:[#allocation6 + $0x15]]  ;;  %s755_s24 = sshll.u32 %s925_s23, 4  ;;  %s756_s24 = int_to_ptr.vmem [resolvable:$true] %s755_s24 }
  0x3b   :  { %v246_v38 = vadd.f32 %v245_v7, %v244_v22  ;;  %v329_v45 = vadd.f32 %v328_v30, %v327_v32  ;;  %v1115_v36 = vsub.f32 0.0, %v995_v14  ;;  %v1117_v37 = vmul.f32 2.0, %v191_v34  ;;  %s1350_s9 = sld [smem:[#allocation6 + $0x16]] }
  0x3c   :  { %v1119_v39 = vmul.f32 2.0, %v193_v35  ;;  %v273_v50 = vmul.f32 %v1100_v41, %v1110_v48  ;;  %v274_v52 = vmul.f32 %v1095_v33, %v1107_v46  ;;  %v276_v53 = vmul.f32 %v1102_v42, %v1110_v48  ;;  %s1352_s10 = sld [smem:[#allocation6 + $0x17]] }
  0x3d   :  { %v1112_v49 = vsub.f32 0.0, %v246_v38  ;;  %825 = vrsqrt.f32 %v329_v45  ;;  %v277_v14 = vmul.f32 %v1104_v44, %v1107_v46  ;;  %v113_v57 = vstv %s1081_s26  ;;  %s1428_s11 = sld [smem:[#allocation8 + $0x2]] }
  0x3e   :  { %v115_v59 = vstv %s1085_s27  ;;  %v117_v60 = vstv %s1093_s28  ;;  %v258_v61 = vmul.f32 %v1115_v36, %v992_v13  ;;  %v263_v3 = vmul.f32 %v1115_v36, %v1000_v17  ;;  %s1438_s12 = sld [smem:[#allocation8 + $0x3]]  ;;  %s757_s27 = sshll.u32 %s1729_s4, 4  ;;  %s758_s27 = int_to_ptr.hbm [resolvable:$true] %s757_s27 }
  0x3f   :  { %1741 = vst [vmem:[#allocation17_spill] sm:$0xff] %v1112_v49  ;;  %v248_v40 = vmul.f32 %v1112_v49, %v1091_v31  ;;  %v1143_v6 = vsub.f32 %v273_v50, %v274_v52  ;;  %v1145_v8 = vsub.f32 %v276_v53, %v277_v14  ;;  %v279_v9 = vmul.f32 %v1117_v37, %v1110_v48  ;;  %s1446_s13 = sld [smem:[#allocation2 + $0xc]] }
  0x40   :  { %v280_v13 = vmul.f32 %v1119_v39, %v1107_v46  ;;  %v268_v12 = vmul.f32 %v1115_v36, %v1013_v25  ;;  %v261_v16 = vmul.f32 %v113_v57, %v975_v0  ;;  %v266_v18 = vmul.f32 %v115_v59, %v975_v0  ;;  %s1454_s14 = sld [smem:[#allocation9]] }
  0x41   :  { %v249_v54 = vsub.f32 0.0, %v248_v40  ;;  %v254_v55 = vmul.f32 %v248_v40, %v1070_v11  ;;  %v271_v20 = vmul.f32 %v117_v60, %v975_v0  ;;  %v288_v22 = vmul.f32 %v1143_v6, %v1053_v63  ;;  %s1457_s15 = sld [smem:[#allocation9 + $0x1]] }
  0x42   :  { %v281_v25 = vsub.f32 %v279_v9, %v280_v13  ;;  %v289_v23 = vmul.f32 %v1145_v8, %v1062_v5  ;;  %vm336_vm4 = vweird.f32 %v329_v45  ;;  %v1214_v13 = vstv %s1180_s0  ;;  %s1463_s16 = sld [smem:[#allocation9 + $0x2]] }
  0x43   :  { %v250_v62 = vmul.f32 %v249_v54, %v1043_v56  ;;  %v252_v1 = vmul.f32 %v249_v54, %v1046_v58  ;;  %v255_v2 = vsub.f32 %v78_v47, %v254_v55  ;;  %v826_v4 = vpop.eup %825  ;;  %s1469_s17 = sld [smem:[#allocation9 + $0x3]] }
  0x44   :  { %v331_v19 = vmul.f32 %v826_v4, %v329_v45  ;;  %vm337_vm5 = vweird.f32 %v826_v4  ;;  %v290_v35 = vadd.f32 %v289_v23, %v288_v22  ;;  %v291_v38 = vmul.f32 %v281_v25, %v1077_v21  ;;  %s1473_s18 = sld [smem:[#allocation9 + $0x4]] }
  0x45   :  { %v1153_v10 = vsub.f32 %v250_v62, %v107_v29  ;;  %v1157_v47 = vsub.f32 %v252_v1, %v109_v43  ;;  %v1161_v17 = vsub.f32 %v255_v2, %v111_v51  ;;  %vm338_vm6 = vmor %vm336_vm4, %vm337_vm5  ;;  %v296_v22 = vmul.f32 %v1143_v6, %v1112_v49  ;;  %s1475_s19 = sld [smem:[#allocation9 + $0x5]] }
  0x46   :  { %v332_v24 = vmul.f32 %v826_v4, %v331_v19  ;;  %s1479_s20 = sld [smem:[#allocation9 + $0x6]] }
  0x47   :  { %v259_v29 = vmul.f32 %v1153_v10, %v998_v15  ;;  %v264_v43 = vmul.f32 %v1157_v47, %v998_v15  ;;  %v269_v51 = vmul.f32 %v1161_v17, %v998_v15  ;;  %s1487_s21 = sld [smem:[#allocation9 + $0x7]] }
  0x48   :  { %v333_v7 = vmul.f32 0.5, %v332_v24  ;;  %s1490_s22 = sld [smem:[#allocation9 + $0x8]] }
  0x49   :  { %v260_v26 = vsub.f32 %v258_v61, %v259_v29  ;;  %v265_v27 = vsub.f32 %v263_v3, %v264_v43  ;;  %v270_v28 = vsub.f32 %v268_v12, %v269_v51  ;;  %v292_v3 = vadd.f32 %v291_v38, %v290_v35 }
  0x4a   :  { %v334_v40 = vsub.f32 1.5, %v333_v7  ;;  %v1217_v12 = vstv %s1186_s29  ;;  %v119_v35 = vstv %s1207_s2  ;;  %v121_v38 = vstv %s1209_s30 }
  0x4b   :  { %v1188_v30 = vadd.f32 %v261_v16, %v260_v26  ;;  %v1190_v32 = vadd.f32 %v266_v18, %v265_v27  ;;  %v1192_v34 = vadd.f32 %v271_v20, %v270_v28  ;;  %v1219_v16 = vstv %s791_s1 }
  0x4c   :  { %v335_v14 = vmul.f32 %v826_v4, %v334_v40  ;;  %v301_v27 = vmul.f32 %v1145_v8, %v1112_v49  ;;  %v306_v28 = vmul.f32 %v281_v25, %v1112_v49  ;;  %v123_v40 = vstv %s1211_s3 }
  0x4d   :  { %v282_v50 = vmul.f32 %v1188_v30, %v1043_v56  ;;  %v283_v52 = vmul.f32 %v1190_v32, %v1046_v58  ;;  %v285_v45 = vmul.f32 %v1192_v34, %v1070_v11  ;;  %v344_v53 = vmul.f32 %v1188_v30, %v1188_v30 }
  0x4e   :  { %v345_v54 = vmul.f32 %v1190_v32, %v1190_v32  ;;  %v347_v55 = vmul.f32 %v1192_v34, %v1192_v34  ;;  %v339_v62 = vsel %vm338_vm6, %v826_v4, %v335_v14  ;;  %v1261_v8 = vstv %s792_s5 }
  0x4f   :  { %v284_v61 = vadd.f32 %v283_v52, %v282_v50  ;;  %v340_v9 = vmul.f32 -1.0, %v339_v62 }
  0x50   :  { %v346_v1 = vadd.f32 %v345_v54, %v344_v53 }
  0x51   :  { %v286_v2 = vadd.f32 %v285_v45, %v284_v61  ;;  %v1222_v29 = vmul.f32 %v340_v9, %v1053_v63  ;;  %v1225_v4 = vmul.f32 %v340_v9, %v1062_v5  ;;  %v1228_v43 = vmul.f32 %v340_v9, %v1077_v21 }
  0x52   :  { %v348_v18 = vadd.f32 %v347_v55, %v346_v1  ;;  %v315_v9 = vmul.f32 %v1115_v36, %v1157_v47 }
  0x53   :  { %v287_v19 = vsub.f32 0.0, %v286_v2  ;;  %1742 = vst [vmem:[#allocation18_spill] sm:$0xff] %v1225_v4  ;;  %v382_v20 = vmul.f32 %v1225_v4, %v1219_v16  ;;  %v383_v63 = vmul.f32 %v1228_v43, %v1217_v12  ;;  %v385_v5 = vmul.f32 %v1228_v43, %v1214_v13 }
  0x54   :  { %1743 = vst [vmem:[#allocation19_spill] sm:$0xff] %v1228_v43  ;;  %827 = vrsqrt.f32 %v348_v18  ;;  %v386_v21 = vmul.f32 %v1222_v29, %v1219_v16  ;;  %v388_v23 = vmul.f32 %v1222_v29, %v1217_v12  ;;  %v389_v24 = vmul.f32 %v1225_v4, %v1214_v13 }
  0x55   :  { %v293_v51 = vsub.f32 %v287_v19, %v292_v3  ;;  %v1249_v7 = vsub.f32 %v382_v20, %v383_v63  ;;  %v1270_v2 = vstv %s1230_s6  ;;  %v310_v3 = vmul.f32 %v1115_v36, %v1153_v10 }
  0x56   :  { %v1255_v6 = vsub.f32 %v385_v5, %v386_v21  ;;  %v1263_v25 = vsub.f32 %v388_v23, %v389_v24  ;;  %v320_v19 = vmul.f32 %v1115_v36, %v1161_v17  ;;  %vm355_vm7 = vweird.f32 %v348_v18 }
  0x57   :  { %v294_v26 = vsub.f32 0.0, %v293_v51  ;;  %v448_v14 = vmul.f32 %v1249_v7, %v1249_v7  ;;  %v1290_v17 = vstv %s1253_s7  ;;  %v313_v24 = vmul.f32 %v119_v35, %v975_v0 }
  0x58   :  { %v449_v54 = vmul.f32 %v1255_v6, %v1255_v6  ;;  %v451_v21 = vmul.f32 %v1263_v25, %v1263_v25 }
  0x59   :  { %v295_v50 = vmul.f32 %v294_v26, %v1043_v56  ;;  %v300_v52 = vmul.f32 %v294_v26, %v1046_v58  ;;  %v305_v45 = vmul.f32 %v294_v26, %v1070_v11  ;;  %v323_v26 = vmul.f32 %v123_v40, %v975_v0 }
  0x5a   :  { %v828_v53 = vpop.eup %827  ;;  %v403_v40 = vmul.f32 %v1228_v43, %v1261_v8 }
  0x5b   :  { %v297_v55 = vsub.f32 %v295_v50, %v296_v22  ;;  %v302_v61 = vsub.f32 %v300_v52, %v301_v27  ;;  %v307_v62 = vsub.f32 %v305_v45, %v306_v28  ;;  %v350_v1 = vmul.f32 %v828_v53, %v348_v18 }
  0x5c   :  { %vm356_vm8 = vweird.f32 %v828_v53  ;;  %v450_v22 = vadd.f32 %v449_v54, %v448_v14 }
  0x5d   :  { %v298_v51 = vmul.f32 %v297_v55, %v1091_v31  ;;  %v303_v20 = vmul.f32 %v302_v61, %v1091_v31  ;;  %v308_v63 = vmul.f32 %v307_v62, %v1091_v31  ;;  %v351_v5 = vmul.f32 %v828_v53, %v350_v1  ;;  %vm357_vm9 = vmor %vm355_vm7, %vm356_vm8 }
  0x5e   :  { %v318_v31 = vmul.f32 %v121_v38, %v975_v0  ;;  %v400_v38 = vmul.f32 %v1225_v4, %v1290_v17  ;;  %v401_v0 = vmul.f32 %v1228_v43, %v1270_v2  ;;  %v406_v62 = vmul.f32 %v1222_v29, %v1270_v2 }
  0x5f   :  { %v299_v10 = vsub.f32 %v298_v51, %v113_v57  ;;  %v304_v47 = vsub.f32 %v303_v20, %v115_v59  ;;  %v309_v23 = vsub.f32 %v308_v63, %v117_v60  ;;  %v352_v36 = vmul.f32 0.5, %v351_v5 }
  0x60   :  { %v1300_v59 = vadd.f32 %v451_v21, %v450_v22  ;;  %v407_v1 = vmul.f32 %v1225_v4, %v1261_v8  ;;  %v402_v5 = vsub.f32 %v400_v38, %v401_v0 }
  0x61   :  { %v311_v27 = vmul.f32 %v299_v10, %v998_v15  ;;  %v316_v28 = vmul.f32 %v304_v47, %v998_v15  ;;  %v321_v50 = vmul.f32 %v309_v23, %v998_v15  ;;  %v353_v57 = vsub.f32 1.5, %v352_v36 }
  0x62   :  { %v404_v15 = vmul.f32 %v1222_v29, %v1290_v17  ;;  %829 = vrsqrt.f32 %v1300_v59  ;;  %v408_v36 = vsub.f32 %v406_v62, %v407_v1  ;;  %vm459_vm10 = vweird.f32 %v1300_v59 }
  0x63   :  { %v312_v60 = vsub.f32 %v310_v3, %v311_v27  ;;  %v317_v52 = vsub.f32 %v315_v9, %v316_v28  ;;  %v322_v45 = vsub.f32 %v320_v19, %v321_v50  ;;  %v354_v35 = vmul.f32 %v828_v53, %v353_v57 }
  0x64   :  { %v405_v22 = vsub.f32 %v403_v40, %v404_v15 }
  0x65   :  { %v1310_v18 = vadd.f32 %v313_v24, %v312_v60  ;;  %v1312_v14 = vadd.f32 %v318_v31, %v317_v52  ;;  %v1314_v54 = vadd.f32 %v323_v26, %v322_v45  ;;  %v358_v55 = vsel %vm357_vm9, %v828_v53, %v354_v35 }
  0x66   :  { %v359_v61 = vmul.f32 -1.0, %v358_v55 }
  0x67   :  { %v363_v3 = vmul.f32 %v1310_v18, %v1310_v18  ;;  %v364_v9 = vmul.f32 %v1312_v14, %v1312_v14  ;;  %v366_v19 = vmul.f32 %v1314_v54, %v1314_v54 }
  0x68   :  { %v1328_v53 = vmul.f32 %v359_v61, %v1188_v30  ;;  %v1331_v51 = vmul.f32 %v359_v61, %v1190_v32  ;;  %v1334_v20 = vmul.f32 %v359_v61, %v1192_v34  ;;  %v830_v26 = vpop.eup %829 }
  0x69   :  { %v365_v63 = vadd.f32 %v364_v9, %v363_v3  ;;  %v454_v60 = vmul.f32 %v830_v26, %v1300_v59  ;;  %vm460_vm11 = vweird.f32 %v830_v26 }
  0x6a   :  { %v391_v21 = vmul.f32 %v1331_v51, %v1219_v16  ;;  %v392_v10 = vmul.f32 %v1334_v20, %v1217_v12  ;;  %v394_v47 = vmul.f32 %v1334_v20, %v1214_v13  ;;  %v395_v30 = vmul.f32 %v1328_v53, %v1219_v16  ;;  %vm461_vm12 = vmor %vm459_vm10, %vm460_vm11 }
  0x6b   :  { %v367_v32 = vadd.f32 %v366_v19, %v365_v63  ;;  %v397_v34 = vmul.f32 %v1328_v53, %v1217_v12  ;;  %v398_v23 = vmul.f32 %v1331_v51, %v1214_v13  ;;  %v455_v38 = vmul.f32 %v830_v26, %v454_v60 }
  0x6c   :  { %v393_v24 = vsub.f32 %v391_v21, %v392_v10  ;;  %v396_v31 = vsub.f32 %v394_v47, %v395_v30  ;;  %v421_v55 = vmul.f32 %v1331_v51, %v1290_v17  ;;  %v422_v62 = vmul.f32 %v1334_v20, %v1270_v2 }
  0x6d   :  { %831 = vrsqrt.f32 %v367_v32  ;;  %v399_v27 = vsub.f32 %v397_v34, %v398_v23  ;;  %v456_v61 = vmul.f32 0.5, %v455_v38  ;;  %v424_v1 = vmul.f32 %v1334_v20, %v1261_v8 }
  0x6e   :  { %v409_v28 = vadd.f32 %v402_v5, %v393_v24  ;;  %v410_v50 = vadd.f32 %v405_v22, %v396_v31  ;;  %v425_v3 = vmul.f32 %v1328_v53, %v1290_v17  ;;  %v427_v63 = vmul.f32 %v1328_v53, %v1270_v2 }
  0x6f   :  { %v411_v57 = vadd.f32 %v408_v36, %v399_v27  ;;  %v428_v5 = vmul.f32 %v1331_v51, %v1261_v8  ;;  %v457_v22 = vsub.f32 1.5, %v456_v61  ;;  %v137_v21 = vstv %s1348_s8 }
  0x70   :  { %v466_v52 = vmul.f32 %v409_v28, %v409_v28  ;;  %v467_v45 = vmul.f32 %v410_v50, %v410_v50  ;;  %v139_v10 = vstv %s1350_s9  ;;  %v141_v47 = vstv %s1352_s10 }
  0x71   :  { %v469_v35 = vmul.f32 %v411_v57, %v411_v57  ;;  %vm374_vm13 = vweird.f32 %v367_v32  ;;  %v458_v17 = vmul.f32 %v830_v26, %v457_v22  ;;  %v423_v34 = vsub.f32 %v421_v55, %v422_v62 }
  0x72   :  { %v468_v40 = vadd.f32 %v467_v45, %v466_v52  ;;  %v426_v36 = vsub.f32 %v424_v1, %v425_v3  ;;  %v429_v2 = vsub.f32 %v427_v63, %v428_v5  ;;  %v1381_v31 = vmul.f32 %v1225_v4, %v141_v47 }
  0x73   :  { %v832_v0 = vpop.eup %831  ;;  %v462_v24 = vsel %vm461_vm12, %v830_v26, %v458_v17  ;;  %v1384_v59 = vmul.f32 %v1228_v43, %v139_v10  ;;  %v1387_v27 = vmul.f32 %v1228_v43, %v137_v21  ;;  %v430_v60 = vmul.f32 2.0, %v423_v34 }
  0x74   :  { %v369_v15 = vmul.f32 %v832_v0, %v367_v32  ;;  %v1364_v9 = vadd.f32 %v469_v35, %v468_v40  ;;  %vm375_vm14 = vweird.f32 %v832_v0  ;;  %v1390_v28 = vmul.f32 %v462_v24, %v1249_v7 }
  0x75   :  { %vm1376_vm15 = vmor %vm374_vm13, %vm375_vm14  ;;  %v1393_v50 = vmul.f32 %v462_v24, %v1255_v6  ;;  %v1396_v26 = vmul.f32 %v462_v24, %v1263_v25  ;;  %v440_v52 = vmul.f32 %v1222_v29, %v141_v47  ;;  %v442_v45 = vmul.f32 %v1222_v29, %v139_v10 }
  0x76   :  { %v370_v19 = vmul.f32 %v832_v0, %v369_v15  ;;  %833 = vrsqrt.f32 %v1364_v9  ;;  %v443_v35 = vmul.f32 %v1225_v4, %v137_v21  ;;  %v431_v40 = vmul.f32 2.0, %v426_v36 }
  0x77   :  { %v432_v7 = vmul.f32 2.0, %v429_v2  ;;  %vm477_vm0 = vweird.f32 %v1364_v9  ;;  %v502_v25 = vmul.f32 %v1393_v50, %v1228_v43  ;;  %v503_v55 = vmul.f32 %v1396_v26, %v1225_v4 }
  0x78   :  { %v371_v30 = vmul.f32 0.5, %v370_v19  ;;  %v511_v62 = vmul.f32 %v1390_v28, %v1390_v28  ;;  %v514_v1 = vmul.f32 %v1396_v26, %v1396_v26  ;;  %v505_v5 = vmul.f32 %v1396_v26, %v1222_v29 }
  0x79   :  { %v506_v21 = vmul.f32 %v1390_v28, %v1228_v43  ;;  %v438_v24 = vsub.f32 %v1381_v31, %v1384_v59  ;;  %v508_v31 = vmul.f32 %v1390_v28, %v1225_v4  ;;  %v509_v59 = vmul.f32 %v1393_v50, %v1222_v29 }
  0x7a   :  { %v372_v23 = vsub.f32 1.5, %v371_v30  ;;  %vm748_vm13 = vcmask 24576  }
  0x7c   :  { %v373_v32 = vmul.f32 %v832_v0, %v372_v23  ;;  %v834_v57 = vpop.eup %833 }
  0x7d   :  { %v472_v15 = vmul.f32 %v834_v57, %v1364_v9  ;;  %vm478_vm1 = vweird.f32 %v834_v57 }
  0x7e   :  { %v377_v38 = vsel %vm1376_vm15, %v832_v0, %v373_v32  ;;  %v512_v0 = vmul.f32 %v1393_v50, %v1393_v50  ;;  %vm479_vm2 = vmor %vm477_vm0, %vm478_vm1 }
  0x7f   :  { %v378_v6 = vmul.f32 -1.0, %v377_v38  ;;  %v473_v61 = vmul.f32 %v834_v57, %v472_v15 }
  0x80   :  { %v513_v10 = vadd.f32 %v512_v0, %v511_v62 }
  0x81   :  { %v1416_v3 = vmul.f32 %v378_v6, %v1310_v18  ;;  %v1419_v19 = vmul.f32 %v378_v6, %v1312_v14  ;;  %v1422_v63 = vmul.f32 %v378_v6, %v1314_v54  ;;  %v474_v22 = vmul.f32 0.5, %v473_v61 }
  0x82   :  { %v1444_v23 = vadd.f32 %v514_v1, %v513_v10 }
  0x83   :  { %v412_v18 = vmul.f32 %v1419_v19, %v1219_v16  ;;  %v413_v14 = vmul.f32 %v1422_v63, %v1217_v12  ;;  %v415_v54 = vmul.f32 %v1422_v63, %v1214_v13  ;;  %v416_v47 = vmul.f32 %v1416_v3, %v1219_v16 }
  0x84   :  { %v418_v30 = vmul.f32 %v1416_v3, %v1217_v12  ;;  %v419_v17 = vmul.f32 %v1419_v19, %v1214_v13  ;;  %v475_v34 = vsub.f32 1.5, %v474_v22  ;;  %v441_v16 = vsub.f32 %v1387_v27, %v440_v52 }
  0x85   :  { %v414_v36 = vsub.f32 %v412_v18, %v413_v14  ;;  %v417_v2 = vsub.f32 %v415_v54, %v416_v47  ;;  %v444_v13 = vsub.f32 %v442_v45, %v443_v35  ;;  %835 = vrsqrt.f32 %v1444_v23 }
  0x86   :  { %v420_v12 = vsub.f32 %v418_v30, %v419_v17  ;;  %v476_v8 = vmul.f32 %v834_v57, %v475_v34  ;;  %v1465_v52 = vsub.f32 %v502_v25, %v503_v55  ;;  %v1467_v45 = vsub.f32 %v505_v5, %v506_v21 }
  0x87   :  { %v433_v32 = vadd.f32 %v430_v60, %v414_v36  ;;  %v434_v38 = vadd.f32 %v431_v40, %v417_v2  ;;  %v1477_v25 = vsub.f32 %v508_v31, %v509_v59  ;;  %v1485_v5 = vstv %s1428_s11 }
  0x88   :  { %v435_v9 = vadd.f32 %v432_v7, %v420_v12  ;;  %v480_v27 = vsel %vm479_vm2, %v834_v57, %v476_v8  ;;  %1747 = vst [vmem:[#allocation21_spill] sm:$0xff] %v1485_v5  ;;  %v535_v10 = vmul.f32 %v1465_v52, %v1328_v53  ;;  %v536_v18 = vmul.f32 %v1467_v45, %v1331_v51 }
  0x89   :  { %v445_v35 = vadd.f32 %v438_v24, %v433_v32  ;;  %v446_v60 = vadd.f32 %v441_v16, %v434_v38  ;;  %v481_v40 = vmul.f32 %v480_v27, %v1390_v28  ;;  %v482_v15 = vmul.f32 %v480_v27, %v1393_v50  ;;  %1746 = vst [vmem:[#allocation20_spill] sm:$0xff] %v1477_v25 }
  0x8a   :  { %v447_v6 = vadd.f32 %v444_v13, %v435_v9  ;;  %v483_v61 = vmul.f32 %v480_v27, %v1396_v26  ;;  %v554_v14 = vmul.f32 %v1465_v52, %v1416_v3  ;;  %v555_v54 = vmul.f32 %v1467_v45, %v1419_v19 }
  0x8b   :  { %v484_v7 = vmul.f32 %v445_v35, %v445_v35  ;;  %v485_v57 = vmul.f32 %v446_v60, %v446_v60  ;;  %v836_v55 = vpop.eup %835  ;;  %v540_v0 = vmul.f32 %v1465_v52, %v481_v40  ;;  %v541_v1 = vmul.f32 %v1467_v45, %v482_v15 }
  0x8c   :  { %v487_v62 = vmul.f32 %v447_v6, %v447_v6  ;;  %v517_v21 = vmul.f32 %v836_v55, %v1444_v23  ;;  %v1501_v47 = vstv %s1438_s12  ;;  %v1504_v30 = vstv %s1446_s13 }
  0x8d   :  { %v486_v22 = vadd.f32 %v485_v57, %v484_v7  ;;  %1748 = vst [vmem:[#allocation22_spill] sm:$0xff] %v1501_v47  ;;  %v1730_v36 = vstv %s1454_s14  ;;  %v1731_v2 = vstv %s1457_s15  ;;  %v542_v24 = vadd.f32 %v541_v1, %v540_v0 }
  0x8e   :  { %v518_v34 = vmul.f32 %v836_v55, %v517_v21  ;;  %v543_v16 = vmul.f32 %v1477_v25, %v483_v61  ;;  %vm522_vm3 = vweird.f32 %v1444_v23  ;;  %vm523_vm4 = vweird.f32 %v836_v55 }
  0x8f   :  { %v1506_v17 = vadd.f32 %v487_v62, %v486_v22  ;;  %v537_v13 = vadd.f32 %v536_v18, %v535_v10  ;;  %v538_v8 = vmul.f32 %v1477_v25, %v1334_v20  ;;  %v556_v32 = vadd.f32 %v555_v54, %v554_v14  ;;  %vm524_vm5 = vmor %vm522_vm3, %vm523_vm4 }
  0x90   :  { %v519_v12 = vmul.f32 0.5, %v518_v34  ;;  %v557_v38 = vmul.f32 %v1477_v25, %v1422_v63  ;;  %v1732_v59 = vstv %s1469_s17  ;;  %v207_v9 = vstv %s1473_s18 }
  0x91   :  { %837 = vrsqrt.f32 %v1506_v17  ;;  %v544_v40 = vadd.f32 %v543_v16, %v542_v24  ;;  %v580_v23 = vmul.f32 %v1465_v52, %v1043_v56  ;;  %v581_v6 = vmul.f32 %v1467_v45, %v1046_v58 }
  0x92   :  { %v520_v27 = vsub.f32 1.5, %v519_v12  ;;  %v585_v7 = vmul.f32 %v1222_v29, %v1100_v41  ;;  %v586_v57 = vmul.f32 %v1225_v4, %v1102_v42  ;;  %v1532_v0 = vadd.f32 %v538_v8, %v537_v13 }
  0x93   :  { %v1534_v1 = vadd.f32 %v557_v38, %v556_v32  ;;  %v574_v10 = vmul.f32 %v1222_v29, %v1095_v33  ;;  %v575_v18 = vmul.f32 %v1225_v4, %v1104_v44  ;;  %v583_v14 = vmul.f32 %v1477_v25, %v1070_v11 }
  0x94   :  { %v521_v15 = vmul.f32 %v836_v55, %v520_v27  ;;  %vm495_vm6 = vweird.f32 %v1506_v17  ;;  %v1553_v16 = vsub.f32 0.0, %v544_v40  ;;  %v582_v12 = vadd.f32 %v581_v6, %v580_v23 }
  0x95   :  { %v587_v13 = vadd.f32 %v586_v57, %v585_v7  ;;  %v588_v27 = vmul.f32 %v1228_v43, %v1117_v37  ;;  %v591_v40 = vmul.f32 %v1465_v52, %v1095_v33  ;;  %v592_v23 = vmul.f32 %v1467_v45, %v1104_v44 }
  0x96   :  { %v525_v21 = vsel %vm524_vm5, %v836_v55, %v521_v15  ;;  %v551_v57 = vmul.f32 %v1553_v16, %v1532_v0  ;;  %v644_v60 = vmul.f32 %v207_v9, %v1110_v48 }
  0x97   :  { %v838_v22 = vpop.eup %837  ;;  %v1545_v34 = vmul.f32 %v525_v21, %v1390_v28  ;;  %v1548_v24 = vmul.f32 %v525_v21, %v1393_v50  ;;  %v1551_v55 = vmul.f32 %v525_v21, %v1396_v26  ;;  %v576_v21 = vadd.f32 %v575_v18, %v574_v10 }
  0x98   :  { %v490_v54 = vmul.f32 %v838_v22, %v1506_v17  ;;  %vm496_vm7 = vweird.f32 %v838_v22  ;;  %v608_v10 = vmul.f32 %v1553_v16, %v1222_v29  ;;  %v613_v18 = vmul.f32 %v1553_v16, %v1225_v4 }
  0x99   :  { %v529_v32 = vmul.f32 %v1545_v34, %v1328_v53  ;;  %v530_v38 = vmul.f32 %v1548_v24, %v1331_v51  ;;  %v532_v15 = vmul.f32 %v1551_v55, %v1334_v20  ;;  %v546_v53 = vmul.f32 %v1545_v34, %v1416_v3  ;;  %vm497_vm8 = vmor %vm495_vm6, %vm496_vm7 }
  0x9a   :  { %v491_v8 = vmul.f32 %v838_v22, %v490_v54  ;;  %v547_v51 = vmul.f32 %v1548_v24, %v1419_v19  ;;  %v577_v20 = vmul.f32 %v1228_v43, %v1119_v39  ;;  %v1575_v54 = vadd.f32 %v583_v14, %v582_v12 }
  0x9b   :  { %v531_v7 = vadd.f32 %v530_v38, %v529_v32  ;;  %v1577_v32 = vadd.f32 %v588_v27, %v587_v13  ;;  %v594_v3 = vmul.f32 %v1477_v25, %v1119_v39  ;;  %v593_v19 = vadd.f32 %v592_v23, %v591_v40 }
  0x9c   :  { %v492_v6 = vmul.f32 0.5, %v491_v8  ;;  %v618_v14 = vmul.f32 %v1553_v16, %v1228_v43  ;;  %v548_v13 = vadd.f32 %v547_v51, %v546_v53  ;;  %v549_v38 = vmul.f32 %v1551_v55, %v1422_v63 }
  0x9d   :  { %v533_v8 = vadd.f32 %v532_v15, %v531_v7  ;;  %v638_v27 = vmul.f32 %v1730_v36, %v1107_v46  ;;  %v569_v17 = vmul.f32 %v1545_v34, %v1043_v56  ;;  %v570_v15 = vmul.f32 %v1548_v24, %v1046_v58 }
  0x9e   :  { %v493_v62 = vsub.f32 1.5, %v492_v6  ;;  %v639_v40 = vmul.f32 %v1731_v2, %v1110_v48  ;;  %v643_v23 = vmul.f32 %v1732_v59, %v1107_v46  ;;  %v596_v63 = vmul.f32 %v1545_v34, %v1100_v41 }
  0x9f   :  { %v534_v6 = vsub.f32 0.0, %v533_v8  ;;  %v606_v7 = vmul.f32 %v1532_v0, %v1545_v34  ;;  %v611_v2 = vmul.f32 %v1532_v0, %v1548_v24  ;;  %v550_v61 = vadd.f32 %v549_v38, %v548_v13 }
  0xa0   :  { %v494_v12 = vmul.f32 %v838_v22, %v493_v62 }
  0xa1   :  { %v605_v8 = vmul.f32 %v534_v6, %v1465_v52  ;;  %v615_v38 = vmul.f32 %v534_v6, %v1477_v25  ;;  %v566_v31 = vmul.f32 %v1532_v0, %v534_v6  ;;  %v559_v4 = vmul.f32 %v1553_v16, %v534_v6 }
  0xa2   :  { %v498_v62 = vsel %vm497_vm8, %v838_v22, %v494_v12  ;;  %v597_v22 = vmul.f32 %v1548_v24, %v1102_v42  ;;  %v616_v12 = vmul.f32 %v1532_v0, %v1551_v55  ;;  %v1749_v0 = vstv %s1463_s16 }
  0xa3   :  { %v499_v53 = vmul.f32 %v498_v62, %v1390_v28  ;;  %v500_v51 = vmul.f32 %v498_v62, %v1393_v50  ;;  %v501_v36 = vmul.f32 %v498_v62, %v1396_v26  ;;  %v610_v26 = vmul.f32 %v534_v6, %v1467_v45 }
  0xa4   :  { %v572_v62 = vmul.f32 %v1551_v55, %v1070_v11  ;;  %v607_v13 = vadd.f32 %v606_v7, %v605_v8  ;;  %v598_v47 = vadd.f32 %v597_v22, %v596_v63  ;;  %v617_v5 = vadd.f32 %v616_v12, %v615_v38 }
  0xa5   :  { %v561_v59 = vmul.f32 %v1465_v52, %v499_v53  ;;  %v562_v28 = vmul.f32 %v1467_v45, %v500_v51  ;;  %v564_v50 = vmul.f32 %v1477_v25, %v501_v36  ;;  %v571_v53 = vadd.f32 %v570_v15, %v569_v17 }
  0xa6   :  { %v612_v49 = vadd.f32 %v611_v2, %v610_v26  ;;  %v552_v51 = vsub.f32 %v550_v61, %v551_v57  ;;  %v599_v36 = vmul.f32 %v1551_v55, %v1117_v37  ;;  %v578_v7 = vadd.f32 %v577_v20, %v576_v21 }
  0xa7   :  { %v563_v35 = vadd.f32 %v562_v28, %v561_v59  ;;  %v609_v8 = vadd.f32 %v608_v10, %v607_v13  ;;  %v590_v59 = vsub.f32 %v1575_v54, %v1577_v32  ;;  %v640_v28 = vadd.f32 %v639_v40, %v638_v27 }
  0xa8   :  { %v614_v25 = vadd.f32 %v613_v18, %v612_v49  ;;  %v641_v2 = vmul.f32 %v1749_v0, %v1504_v30  ;;  %v573_v57 = vadd.f32 %v572_v62, %v571_v53  ;;  %v595_v17 = vadd.f32 %v594_v3, %v593_v19  ;;  %v1755_v0 = vld [vmem:[#allocation20_spill] sm:$0xff] }
  0xa9   :  { %v565_v43 = vadd.f32 %v564_v50, %v563_v35  ;;  %v645_v15 = vadd.f32 %v644_v60, %v643_v23  ;;  %v553_v63 = vsub.f32 0.0, %v552_v51  ;;  %v600_v22 = vadd.f32 %v599_v36, %v598_v47 }
  0xaa   :  { %v619_v35 = vadd.f32 %v618_v14, %v617_v5  ;;  %v1750_v21 = vstv %s1475_s19  ;;  %v620_v16 = vmul.f32 %v609_v8, %v1100_v41  ;;  %v621_v20 = vmul.f32 %v614_v25, %v1102_v42 }
  0xab   :  { %v567_v61 = vsub.f32 %v565_v43, %v566_v31  ;;  %v646_v49 = vmul.f32 %v1750_v21, %v1504_v30  ;;  %v625_v54 = vmul.f32 %v609_v8, %v1095_v33  ;;  %v626_v32 = vmul.f32 %v614_v25, %v1104_v44 }
  0xac   :  { %v560_v43 = vsub.f32 %v1534_v1, %v559_v4  ;;  %v603_v60 = vmul.f32 0.5, %v590_v59  ;;  %v1646_v3 = vadd.f32 %v641_v2, %v640_v28  ;;  %v579_v47 = vsub.f32 %v573_v57, %v578_v7  ;;  %v1754_v7 = vld [vmem:[#allocation18_spill] sm:$0xff] }
  0xad   :  { %v568_v31 = vsub.f32 0.0, %v567_v61  ;;  %v630_v5 = vmul.f32 %v609_v8, %v1043_v56  ;;  %v631_v19 = vmul.f32 %v614_v25, %v1046_v58  ;;  %v1751_v10 = vstv %s1479_s20 }
  0xae   :  { %v648_v18 = vmul.f32 %v1751_v10, %v1107_v46  ;;  %v601_v14 = vsub.f32 %v595_v17, %v600_v22  ;;  %v623_v27 = vmul.f32 %v619_v35, %v1117_v37  ;;  %v647_v40 = vadd.f32 %v646_v49, %v645_v15 }
  0xaf   :  { %v1752_v23 = vstv %s1487_s21  ;;  %v622_v1 = vadd.f32 %v621_v20, %v620_v16  ;;  %v627_v6 = vadd.f32 %v626_v32, %v625_v54  ;;  %v628_v12 = vmul.f32 %v619_v35, %v1119_v39 }
  0xb0   :  { %v649_v4 = vmul.f32 %v1752_v23, %v1110_v48  ;;  %v677_v50 = vmul.f32 %v553_v63, %v1465_v52  ;;  %v678_v26 = vmul.f32 %v560_v43, %v1545_v34  ;;  %v680_v25 = vmul.f32 %v568_v31, %v1222_v29  ;;  %v1758_v23 = vld [vmem:[#allocation22_spill] sm:$0xff] }
  0xb1   :  { %v682_v62 = vmul.f32 %v553_v63, %v1467_v45  ;;  %v683_v13 = vmul.f32 %v560_v43, %v1548_v24  ;;  %v632_v38 = vadd.f32 %v631_v19, %v630_v5  ;;  %v633_v53 = vmul.f32 %v619_v35, %v1070_v11  ;;  %v1756_v45 = vld [vmem:[#allocation19_spill] sm:$0xff] }
  0xb2   :  { %v1753_v51 = vstv %s1490_s22  ;;  %v685_v8 = vmul.f32 %v568_v31, %v1754_v7  ;;  %v679_v59 = vadd.f32 %v678_v26, %v677_v50  ;;  %v687_v52 = vmul.f32 %v553_v63, %v1755_v0 }
  0xb3   :  { %v651_v36 = vmul.f32 %v1753_v51, %v1504_v30  ;;  %v684_v28 = vadd.f32 %v683_v13, %v682_v62  ;;  %v688_v34 = vmul.f32 %v560_v43, %v1551_v55  ;;  %v624_v2 = vadd.f32 %v623_v27, %v622_v1 }
  0xb4   :  { %v629_v29 = vadd.f32 %v628_v12, %v627_v6  ;;  %v650_v61 = vadd.f32 %v649_v4, %v648_v18  ;;  %v690_v57 = vmul.f32 %v568_v31, %v1756_v45  ;;  %v602_v24 = vmul.f32 -0.5, %v579_v47 }
  0xb5   :  { %v681_v17 = vadd.f32 %v680_v25, %v679_v59  ;;  %v686_v15 = vadd.f32 %v685_v8, %v684_v28  ;;  %v689_v22 = vadd.f32 %v688_v34, %v687_v52  ;;  %v604_v35 = vmul.f32 -0.5, %v601_v14  ;;  %v1757_v14 = vld [vmem:[#allocation21_spill] sm:$0xff] }
  0xb6   :  { %v634_v21 = vadd.f32 %v633_v53, %v632_v38  ;;  %v635_v49 = vsub.f32 %v1107_v46, %v624_v2  ;;  %v636_v16 = vsub.f32 %v1110_v48, %v629_v29  ;;  %v652_v43 = vadd.f32 %v651_v36, %v650_v61 }
  0xb7   :  { %v691_v20 = vadd.f32 %v690_v57, %v689_v22  ;;  %v692_v63 = vmul.f32 %v681_v17, %v1100_v41  ;;  %v693_v55 = vmul.f32 %v686_v15, %v1102_v42  ;;  %v697_v54 = vmul.f32 %v681_v17, %v1095_v33 }
  0xb8   :  { %v637_v32 = vsub.f32 %v1504_v30, %v634_v21  ;;  %v654_v31 = vmul.f32 %v647_v40, %v1504_v30  ;;  %v698_v47 = vmul.f32 %v686_v15, %v1104_v44  ;;  %v702_v18 = vmul.f32 %v681_v17, %v1043_v56 }
  0xb9   :  { %v694_v5 = vadd.f32 %v693_v55, %v692_v63  ;;  %v695_v19 = vmul.f32 %v691_v20, %v1117_v37  ;;  %v700_v10 = vmul.f32 %v691_v20, %v1119_v39  ;;  %v662_v41 = vmul.f32 %v602_v24, %v1757_v14 }
  0xba   :  { %v699_v27 = vadd.f32 %v698_v47, %v697_v54  ;;  %v703_v42 = vmul.f32 %v686_v15, %v1046_v58  ;;  %v705_v33 = vmul.f32 %v691_v20, %v1070_v11  ;;  %v663_v4 = vmul.f32 %v635_v49, %v1758_v23 }
  0xbb   :  { %v667_v1 = vmul.f32 %v603_v60, %v1757_v14  ;;  %v668_v44 = vmul.f32 %v636_v16, %v1758_v23  ;;  %v696_v6 = vadd.f32 %v695_v19, %v694_v5  ;;  %v656_v37 = vmul.f32 %v1646_v3, %v1504_v30 }
  0xbc   :  { %v659_v39 = vmul.f32 %v647_v40, %v1107_v46  ;;  %v701_v56 = vadd.f32 %v700_v10, %v699_v27  ;;  %v704_v12 = vadd.f32 %v703_v42, %v702_v18  ;;  %v653_v50 = vmul.f32 %v652_v43, %v1110_v48 }
  0xbd   :  { %v672_v58 = vmul.f32 %v604_v35, %v1757_v14  ;;  %v673_v11 = vmul.f32 %v637_v32, %v1758_v23  ;;  %v707_v26 = vsub.f32 %v624_v2, %v696_v6  ;;  %v657_v25 = vmul.f32 %v652_v43, %v1107_v46 }
  0xbe   :  { %v660_v60 = vmul.f32 %v1646_v3, %v1110_v48  ;;  %v706_v62 = vadd.f32 %v705_v33, %v704_v12  ;;  %v708_v13 = vsub.f32 %v629_v29, %v701_v56  ;;  %v664_v38 = vadd.f32 %v663_v4, %v662_v41 }
  0xbf   :  { %v669_v53 = vadd.f32 %v668_v44, %v667_v1  ;;  %v717_v40 = vmul.f32 %v707_v26, %v1110_v48  ;;  %v738_v51 = vlaneseq  ;;  %v713_v8 = vmul.f32 %v707_v26, %v1504_v30 }
  0xc0   :  { %v709_v36 = vsub.f32 %v634_v21, %v706_v62  ;;  %v711_v7 = vmul.f32 %v708_v13, %v1504_v30  ;;  %v716_v59 = vmul.f32 %v708_v13, %v1107_v46  ;;  %v674_v28 = vadd.f32 %v673_v11, %v672_v58 }
  0xc1   :  { %v655_v34 = vsub.f32 %v653_v50, %v654_v31  ;;  %v658_v2 = vsub.f32 %v656_v37, %v657_v25  ;;  %v661_v29 = vsub.f32 %v659_v39, %v660_v60  ;;  %v665_v61 = vsub.f32 0.0, %v664_v38 }
  0xc2   :  { %v710_v3 = vmul.f32 %v709_v36, %v1110_v48  ;;  %v714_v0 = vmul.f32 %v709_v36, %v1107_v46  ;;  %v718_v52 = vsub.f32 %v716_v59, %v717_v40  ;;  %v670_v30 = vsub.f32 0.0, %v669_v53  ;;  %v1761_v46 = vld [vmem:[#allocation17_spill] sm:$0xff] }
  0xc3   :  { %v739_v24 = vand.u32 127, %v738_v51  ;;  %v675_v17 = vsub.f32 0.0, %v674_v28  ;;  %v1759_v15 = vstv %s1463_s16  ;;  %v1760_v22 = vstv %s1475_s19 }
  0xc4   :  { %v712_v45 = vsub.f32 %v710_v3, %v711_v7  ;;  %v715_v57 = vsub.f32 %v713_v8, %v714_v0  ;;  %v722_v48 = vmul.f32 %v718_v52, %v1759_v15  ;;  %v727_v35 = vmul.f32 %v718_v52, %v1760_v22 }
  0xc5   :  { %v737_v21 = vmax.f32 %v1761_v46, 0.0  ;;  %v1762_v49 = vstv %s1454_s14  ;;  %v1763_v20 = vstv %s1457_s15  ;;  %v1764_v55 = vstv %s1469_s17 }
  0xc6   :  { %v719_v16 = vmul.f32 %v712_v45, %v1762_v49  ;;  %v720_v63 = vmul.f32 %v715_v57, %v1763_v20  ;;  %v724_v54 = vmul.f32 %v712_v45, %v1764_v55  ;;  %v725_v32 = vmul.f32 %v715_v57, %v207_v9 }
  0xc7   :  { %v666_v43 = vadd.f32 %v665_v61, %v655_v34  ;;  %v1765_v31 = vstv %s1479_s20  ;;  %v1766_v5 = vstv %s1487_s21  ;;  %v1767_v10 = vstv %s1490_s22 }
  0xc8   :  { %v729_v47 = vmul.f32 %v712_v45, %v1765_v31  ;;  %v730_v19 = vmul.f32 %v715_v57, %v1766_v5  ;;  %v732_v18 = vmul.f32 %v718_v52, %v1767_v10  ;;  %v671_v14 = vadd.f32 %v670_v30, %v658_v2 }
  0xc9   :  { %v721_v41 = vadd.f32 %v720_v63, %v719_v16  ;;  %v726_v27 = vadd.f32 %v725_v32, %v724_v54  ;;  %vm740_vm9 = vcmp.eq.s32.totalorder %v739_v24, 0  ;;  %v676_v42 = vadd.f32 %v675_v17, %v661_v29 }
  0xca   :  { %v731_v33 = vadd.f32 %v730_v19, %v729_v47  ;;  %v741_v44 = vsel %vm740_vm9, %v737_v21, 0.0  ;;  %vm742_vm10 = vcmp.eq.s32.totalorder %v739_v24, 1  ;;  %vm744_vm11 = vcmp.eq.s32.totalorder %v739_v24, 2 }
  0xcb   :  { %v723_v23 = vadd.f32 %v722_v48, %v721_v41  ;;  %v728_v4 = vadd.f32 %v727_v35, %v726_v27  ;;  %vm746_vm12 = vcmp.eq.s32.totalorder %v739_v24, 3 }
  0xcc   :  { %v733_v1 = vadd.f32 %v732_v18, %v731_v33 }
  0xcd   :  { %v734_v6 = vsub.f32 %v666_v43, %v723_v23  ;;  %v735_v9 = vsub.f32 %v671_v14, %v728_v4 }
  0xce   :  { %v736_v37 = vsub.f32 %v676_v42, %v733_v1 }
  0xcf   :  { %v743_v39 = vsel %vm742_vm10, %v734_v6, %v741_v44 }
  0xd0   :  { %v745_v56 = vsel %vm744_vm11, %v735_v9, %v743_v39 }
  0xd1   :  { %v747_v12 = vsel %vm746_vm12, %v736_v37, %v745_v56 }
  0xd2   :  { %749 = vst.msk [vmem:[#allocation11] sm:$0x1] %vm748_vm13, %v747_v12 }
  0xd3   :  { %760 = dma.vmem_to_hbm [thread:$0]  %s756_s24, 16, %s758_s27, [#allocation3]  }
  0xd4   :  { %919 = dma.done.wait [#allocation3], 16  }
  0xd5   :  { %920 = vsyncadd [#allocation3], 4294967280 }
  0xd6   :  { %765 = vsyncpa [#allocation3], 1 }
  0xd7   :  { %766 = vsyncpa [#allocation4], 1 }
  0xd8   :  { %767 = vsyncpa [#allocation7], 1 }
  0xd9   :  { %768 = vsyncpa [#allocation5], 1 }
  0xda   :  { %769 = vsyncpa [#allocation10], 1 }

</bundles_post_ra>
